<compile_context>
chip_gen: v5e
topology: v5e:2x2
jax: 0.10.0
libtpu: 0.0.40
codegen_flags: <defaults>
</compile_context>

<pallas_src>
import functools

import jax
import jax.numpy as jnp
from jax.experimental import pallas as pl
from jax.experimental.pallas import tpu as pltpu


# ----------------------------- kernels ------------------------------------------------------- #

def _contract_and_store(acc, w_ref, b_ref, o_ref):
    """acc: (C, M, Pt) f32.  out[o, p] = sum_{c,m} w[c, o, m] * acc[c, m, p] + bias[o]."""
    C = acc.shape[0]
    out = None
    for c in range(C):
        part = jnp.dot(w_ref[c], acc[c], preferred_element_type=jnp.float32)  # (O, Pt) on MXU
        out = part if out is None else out + part
    out = out + b_ref[...].astype(jnp.float32)          # (O, 1) broadcast over lanes
    o_ref[...] = out.astype(o_ref.dtype)


def _dynamic_conv_kernel_fused(x_ref, a_ref, mask_ref, w_ref, b_ref, o_ref, *,
                               kernel_size, padding, w_out, pt):
    """Fused-unfold path (stride == 1, output spatial size == input spatial size).

    x_ref:    (C, S)       vertically padded, flattened, halo-extended input slab for this tile
    a_ref:    (M, L, Pt)   per-pixel dynamic atoms (flattened spatial tile, lane dense)
    mask_ref: (K, 1, Pt)   horizontal-border validity masks (one per kw)
    w_ref:    (C, O, M)    compositional coefficients, w[c, o, m] == coeffs[o, c*M + m]
    b_ref:    (O, 1)       bias
    o_ref:    (O, Pt)      output tile
    """
    K = kernel_size
    S = x_ref.shape[1]
    slab = x_ref[...].astype(jnp.float32)               # (C, S)

    # inter[c, m, p] = sum_l x_unf[c, l, p] * atoms[m, l, p], accumulated tap by tap.
    acc = None
    for kh in range(K):
        for kw in range(K):
            l = kh * K + kw
            shift = kh * w_out + kw                      # flat offset of this tap (row pitch == w_out)
            xs = slab if shift == 0 else pltpu.roll(slab, (S - shift) % S, 1)
            xs = xs[:, :pt]                              # (C, Pt)
            if kw != padding:                            # taps that straddle the left/right border
                xs = xs * mask_ref[kw].astype(jnp.float32)
            al = a_ref[:, l, :].astype(jnp.float32)      # (M, Pt)
            term = xs[:, None, :] * al[None, :, :]       # (C, M, Pt)  (VPU)
            acc = term if acc is None else acc + term

    _contract_and_store(acc, w_ref, b_ref, o_ref)


def _dynamic_conv_kernel_unfolded(x_ref, a_ref, w_ref, b_ref, o_ref):
    """General (strided / non-'same') path: x already unfolded to (C, L, Pt)."""
    L = a_ref.shape[1]
    acc = None
    for l in range(L):
        xs = x_ref[:, l, :].astype(jnp.float32)          # (C, Pt)
        al = a_ref[:, l, :].astype(jnp.float32)          # (M, Pt)
        term = xs[:, None, :] * al[None, :, :]           # (C, M, Pt)
        acc = term if acc is None else acc + term
    _contract_and_store(acc, w_ref, b_ref, o_ref)


# ----------------------------- host-side helpers ---------------------------------------------- #

def unfold_nchw(x, kernel_size, stride, padding):
    """im2col matching torch.nn.functional.unfold ordering -> (N, C, K*K, H_out, W_out)."""
    N, C, H, W = x.shape
    K = kernel_size
    H_out = (H + 2 * padding - K) // stride + 1
    W_out = (W + 2 * padding - K) // stride + 1
    xp = jnp.pad(x, ((0, 0), (0, 0), (padding, padding), (padding, padding)))
    patches = []
    for kh in range(K):
        for kw in range(K):
            patches.append(
                xp[:, :, kh:kh + stride * H_out:stride, kw:kw + stride * W_out:stride])
    return jnp.stack(patches, axis=2), H_out, W_out


def _target_lanes():
    # Size spatial tiles for the generation's VMEM: big tiles on 128 MiB parts (v5e/v6e),
    # smaller on 64 MiB (v7x).
    try:
        vmem = int(pltpu.get_tpu_info().vmem_capacity_bytes)
    except Exception:
        vmem = 64 * 1024 * 1024
    return 8192 if vmem >= 96 * 1024 * 1024 else 2048


def _choose_row_tile(h_out, w_out, target_lanes):
    """Largest row-tile TH such that TH | H_out and TH*W_out is lane aligned and <= target."""
    valid = [th for th in range(1, h_out + 1)
             if h_out % th == 0 and (th == h_out or (th * w_out) % 128 == 0)]
    under = [th for th in valid if th * w_out <= target_lanes]
    return max(under) if under else min(valid)


def dynamic_conv(input_tensor, per_pixel_dynamic_atoms, coeffs, bias,
                 kernel_size, stride, padding, num_atoms):
    N, C, H, W = input_tensor.shape
    K = kernel_size
    O = coeffs.shape[0]
    M = num_atoms
    L = K * K
    H_out = (H + 2 * padding - K) // stride + 1
    W_out = (W + 2 * padding - K) // stride + 1
    P = H_out * W_out
    dtype = input_tensor.dtype
    itemsize = jnp.dtype(dtype).itemsize

    atoms = per_pixel_dynamic_atoms.reshape(N, M, L, P)          # free metadata reshape
    w3d = jnp.transpose(coeffs.reshape(O, C, M), (1, 0, 2))      # (C, O, M), w[c,o,m]=coeffs[o,c*M+m]
    b2d = bias.reshape(O, 1).astype(dtype)

    TH = _choose_row_tile(H_out, W_out, _target_lanes())
    Pt = TH * W_out
    T = H_out // TH

    atoms_spec = pl.BlockSpec((None, M, L, Pt), lambda n, t: (n, 0, 0, t))
    w_spec = pl.BlockSpec((C, O, M), lambda n, t: (0, 0, 0))
    b_spec = pl.BlockSpec((O, 1), lambda n, t: (0, 0))
    out_spec = pl.BlockSpec((None, O, Pt), lambda n, t: (n, 0, t))

    fused = (stride == 1 and H_out == H and W_out == W)

    if fused:
        # Per-(batch, row-tile) flat input slab with (K-1)-row halo; the K*K taps are built
        # on-chip.  Only the (small) x stream is repacked; the 9x im2col expansion is gone.
        halo = (K - 1) * (W_out + 1)
        halo_al = -(-halo // 128) * 128
        S = Pt + halo_al
        xf = jnp.pad(input_tensor, ((0, 0), (0, 0), (padding, padding), (0, 0)))
        xf = xf.reshape(N, C, (H + 2 * padding) * W)
        need = (T - 1) * Pt + S
        tail = max(0, need - (padding + xf.shape[-1]))
        xf = jnp.pad(xf, ((0, 0), (0, 0), (padding, tail)))
        slabs = jnp.stack(
            [jax.lax.slice_in_dim(xf, t * Pt, t * Pt + S, axis=2) for t in range(T)],
            axis=1).reshape(N * T, C, S)                          # (N*T, C, S)

        ow = jnp.arange(Pt, dtype=jnp.int32) % W_out
        masks = jnp.stack(
            [((ow + (kw - padding)) >= 0) & ((ow + (kw - padding)) < W_out)
             for kw in range(K)]).astype(dtype).reshape(K, 1, Pt)

        def slab_index_map(n, t):
            return (n * T + t, 0, 0)

        kernel = functools.partial(_dynamic_conv_kernel_fused,
                                   kernel_size=K, padding=padding, w_out=W_out, pt=Pt)
        args = (slabs, atoms, masks, w3d, b2d)
        in_specs = [
            pl.BlockSpec((None, C, S), slab_index_map),
            atoms_spec,
            pl.BlockSpec((K, 1, Pt), lambda n, t: (0, 0, 0)),
            w_spec,
            b_spec,
        ]
        x_block_bytes = C * S * itemsize
    else:
        # Fallback for strided / non-'same' configs: im2col stays in the wrapper, but the kernel
        # is still spatially tiled, accumulating and repack-free.
        x_unf, _, _ = unfold_nchw(input_tensor, K, stride, padding)
        x_unf = x_unf.reshape(N, C, L, P)
        kernel = _dynamic_conv_kernel_unfolded
        args = (x_unf, atoms, w3d, b2d)
        in_specs = [
            pl.BlockSpec((None, C, L, Pt), lambda n, t: (n, 0, 0, t)),
            atoms_spec,
            w_spec,
            b_spec,
        ]
        x_block_bytes = C * L * Pt * itemsize

    est_vmem = (2 * (x_block_bytes + M * L * Pt * itemsize + O * Pt * itemsize)
                + (C * O * M + O + K * Pt) * itemsize
                + 4 * C * M * Pt * 4 + (4 << 20))
    vmem_limit = int(min(120 * 2**20, max(32 * 2**20, est_vmem)))

    out = pl.pallas_call(
        kernel,
        out_shape=jax.ShapeDtypeStruct((N, O, P), dtype),
        grid=(N, T),
        in_specs=in_specs,
        out_specs=out_spec,
        compiler_params=pltpu.CompilerParams(
            dimension_semantics=("parallel", "parallel"),
            vmem_limit_bytes=vmem_limit),
    )(*args)

    return out.reshape(N, O, H_out, W_out)


# ----------------------------- demo / correctness check ---------------------------------------- #

if __name__ == "__main__":
    # module config
    in_channels, out_channels = 4, 8
    kernel_size, stride, padding, num_atoms = 3, 1, 1, 6
    N, H, W = 2, 16, 16
    H_out = (H + 2 * padding - kernel_size) // stride + 1
    W_out = (W + 2 * padding - kernel_size) // stride + 1
    L = kernel_size * kernel_size

    key = jax.random.PRNGKey(0)
    k1, k2, k3 = jax.random.split(key, 3)
    x = jax.random.normal(k1, (N, in_channels, H, W), jnp.float32)
    atoms = jax.random.normal(k2, (N, num_atoms, L, H_out, W_out), jnp.float32)

    # Deterministic parameter init matching module __init__ shapes:
    # kaiming_normal_(mode='fan_out', nonlinearity='relu') on (O, C*M, 1, 1):
    #   fan_out = O * 1 * 1, std = sqrt(2 / fan_out).  Bias zero-initialized.
    std = (2.0 / out_channels) ** 0.5
    coeffs = std * jax.random.normal(
        k3, (out_channels, in_channels * num_atoms, 1, 1), jnp.float32)
    bias = jnp.zeros((out_channels,), jnp.float32)

    out = dynamic_conv(x, atoms, coeffs, bias, kernel_size, stride, padding, num_atoms)
    out = jax.block_until_ready(out)

    # Pure-JAX reference (mirrors the PyTorch forward semantics)
    x_unf_ref, _, _ = unfold_nchw(x, kernel_size, stride, padding)
    inter_ref = jnp.einsum('bmlhw,bclhw->bcmhw', atoms, x_unf_ref)
    inter_ref = inter_ref.reshape(N, in_channels * num_atoms, H_out, W_out)
    ref = jnp.einsum('oc,bchw->bohw',
                     coeffs.reshape(out_channels, in_channels * num_atoms),
                     inter_ref) + bias[None, :, None, None]

    assert out.shape == (N, out_channels, H_out, W_out), out.shape
    assert jnp.allclose(out, ref, atol=1e-4, rtol=1e-4), float(jnp.abs(out - ref).max())
    print("KERNEL_OK")
</pallas_src>

<mosaic_0001>
module attributes {stable_mosaic.version = 11 : i64} {
  func.func @_dynamic_conv_kernel_fused(%arg0: i32, %arg1: i32, %arg2: memref<1x4x384xf32, #tpu.memory_space<vmem>>, %arg3: memref<1x6x9x256xf32, #tpu.memory_space<vmem>>, %arg4: memref<3x1x256xf32, #tpu.memory_space<vmem>>, %arg5: memref<4x8x6xf32, #tpu.memory_space<vmem>>, %arg6: memref<8x1xf32, #tpu.memory_space<vmem>>, %arg7: memref<1x8x256xf32, #tpu.memory_space<vmem>>) attributes {dimension_semantics = [#tpu.dimension_semantics<parallel>, #tpu.dimension_semantics<parallel>], iteration_bounds = array<i64: 2, 1>, scalar_prefetch = 0 : i64, scratch_operands = 0 : i64, tpu.core_type = #tpu.core_type<tc>, window_params = [{transform_indices = @transform_0, window_bounds = array<i64: 1, 4, 384>}, {transform_indices = @transform_1, window_bounds = array<i64: 1, 6, 9, 256>}, {pipeline_mode = #tpu.pipeline_mode<synchronous>, transform_indices = @transform_2, window_bounds = array<i64: 3, 1, 256>}, {pipeline_mode = #tpu.pipeline_mode<synchronous>, transform_indices = @transform_3, window_bounds = array<i64: 4, 8, 6>}, {pipeline_mode = #tpu.pipeline_mode<synchronous>, transform_indices = @transform_4, window_bounds = array<i64: 8, 1>}, {transform_indices = @transform_5, window_bounds = array<i64: 1, 8, 256>}]} {
    %c0 = arith.constant 0 : index
    %c0_0 = arith.constant 0 : index
    %c0_1 = arith.constant 0 : index
    %0 = vector.load %arg2[%c0, %c0_0, %c0_1] : memref<1x4x384xf32, #tpu.memory_space<vmem>>, vector<1x4x384xf32>
    %1 = vector.shape_cast %0 : vector<1x4x384xf32> to vector<4x384xf32>
    %2 = vector.extract_strided_slice %1 {offsets = [0, 0], sizes = [4, 256], strides = [1, 1]} : vector<4x384xf32> to vector<4x256xf32>
    %c0_2 = arith.constant 0 : index
    %c0_3 = arith.constant 0 : index
    %c0_4 = arith.constant 0 : index
    %3 = vector.load %arg4[%c0_2, %c0_3, %c0_4] : memref<3x1x256xf32, #tpu.memory_space<vmem>>, vector<1x1x256xf32>
    %4 = vector.shape_cast %3 : vector<1x1x256xf32> to vector<1x256xf32>
    %5 = vector.broadcast %4 : vector<1x256xf32> to vector<4x256xf32>
    %6 = arith.mulf %2, %5 : vector<4x256xf32>
    %c0_5 = arith.constant 0 : index
    %c0_6 = arith.constant 0 : index
    %c0_7 = arith.constant 0 : index
    %c0_8 = arith.constant 0 : index
    %7 = vector.load %arg3[%c0_5, %c0_6, %c0_7, %c0_8] : memref<1x6x9x256xf32, #tpu.memory_space<vmem>>, vector<1x6x1x256xf32>
    %8 = vector.shape_cast %7 : vector<1x6x1x256xf32> to vector<6x256xf32>
    %9 = vector.shape_cast %6 : vector<4x256xf32> to vector<4x1x256xf32>
    %10 = vector.shape_cast %8 : vector<6x256xf32> to vector<1x6x256xf32>
    %11 = vector.broadcast %9 : vector<4x1x256xf32> to vector<4x6x256xf32>
    %12 = vector.broadcast %10 : vector<1x6x256xf32> to vector<4x6x256xf32>
    %13 = arith.mulf %11, %12 : vector<4x6x256xf32>
    %c383_i32 = arith.constant 383 : i32
    %14 = tpu.dynamic_rotate %1 by %c383_i32 dim 1 : vector<4x384xf32>, i32 -> vector<4x384xf32>
    %15 = vector.extract_strided_slice %14 {offsets = [0, 0], sizes = [4, 256], strides = [1, 1]} : vector<4x384xf32> to vector<4x256xf32>
    %c0_9 = arith.constant 0 : index
    %c0_10 = arith.constant 0 : index
    %c1 = arith.constant 1 : index
    %c0_11 = arith.constant 0 : index
    %16 = vector.load %arg3[%c0_9, %c0_10, %c1, %c0_11] : memref<1x6x9x256xf32, #tpu.memory_space<vmem>>, vector<1x6x1x256xf32>
    %17 = vector.shape_cast %16 : vector<1x6x1x256xf32> to vector<6x256xf32>
    %18 = vector.shape_cast %15 : vector<4x256xf32> to vector<4x1x256xf32>
    %19 = vector.shape_cast %17 : vector<6x256xf32> to vector<1x6x256xf32>
    %20 = vector.broadcast %18 : vector<4x1x256xf32> to vector<4x6x256xf32>
    %21 = vector.broadcast %19 : vector<1x6x256xf32> to vector<4x6x256xf32>
    %22 = arith.mulf %20, %21 : vector<4x6x256xf32>
    %23 = arith.addf %13, %22 : vector<4x6x256xf32>
    %c382_i32 = arith.constant 382 : i32
    %24 = tpu.dynamic_rotate %1 by %c382_i32 dim 1 : vector<4x384xf32>, i32 -> vector<4x384xf32>
    %25 = vector.extract_strided_slice %24 {offsets = [0, 0], sizes = [4, 256], strides = [1, 1]} : vector<4x384xf32> to vector<4x256xf32>
    %c2 = arith.constant 2 : index
    %c0_12 = arith.constant 0 : index
    %c0_13 = arith.constant 0 : index
    %26 = vector.load %arg4[%c2, %c0_12, %c0_13] : memref<3x1x256xf32, #tpu.memory_space<vmem>>, vector<1x1x256xf32>
    %27 = vector.shape_cast %26 : vector<1x1x256xf32> to vector<1x256xf32>
    %28 = vector.broadcast %27 : vector<1x256xf32> to vector<4x256xf32>
    %29 = arith.mulf %25, %28 : vector<4x256xf32>
    %c0_14 = arith.constant 0 : index
    %c0_15 = arith.constant 0 : index
    %c2_16 = arith.constant 2 : index
    %c0_17 = arith.constant 0 : index
    %30 = vector.load %arg3[%c0_14, %c0_15, %c2_16, %c0_17] : memref<1x6x9x256xf32, #tpu.memory_space<vmem>>, vector<1x6x1x256xf32>
    %31 = vector.shape_cast %30 : vector<1x6x1x256xf32> to vector<6x256xf32>
    %32 = vector.shape_cast %29 : vector<4x256xf32> to vector<4x1x256xf32>
    %33 = vector.shape_cast %31 : vector<6x256xf32> to vector<1x6x256xf32>
    %34 = vector.broadcast %32 : vector<4x1x256xf32> to vector<4x6x256xf32>
    %35 = vector.broadcast %33 : vector<1x6x256xf32> to vector<4x6x256xf32>
    %36 = arith.mulf %34, %35 : vector<4x6x256xf32>
    %37 = arith.addf %23, %36 : vector<4x6x256xf32>
    %c368_i32 = arith.constant 368 : i32
    %38 = tpu.dynamic_rotate %1 by %c368_i32 dim 1 : vector<4x384xf32>, i32 -> vector<4x384xf32>
    %39 = vector.extract_strided_slice %38 {offsets = [0, 0], sizes = [4, 256], strides = [1, 1]} : vector<4x384xf32> to vector<4x256xf32>
    %c0_18 = arith.constant 0 : index
    %c0_19 = arith.constant 0 : index
    %c0_20 = arith.constant 0 : index
    %40 = vector.load %arg4[%c0_18, %c0_19, %c0_20] : memref<3x1x256xf32, #tpu.memory_space<vmem>>, vector<1x1x256xf32>
    %41 = vector.shape_cast %40 : vector<1x1x256xf32> to vector<1x256xf32>
    %42 = vector.broadcast %41 : vector<1x256xf32> to vector<4x256xf32>
    %43 = arith.mulf %39, %42 : vector<4x256xf32>
    %c0_21 = arith.constant 0 : index
    %c0_22 = arith.constant 0 : index
    %c3 = arith.constant 3 : index
    %c0_23 = arith.constant 0 : index
    %44 = vector.load %arg3[%c0_21, %c0_22, %c3, %c0_23] : memref<1x6x9x256xf32, #tpu.memory_space<vmem>>, vector<1x6x1x256xf32>
    %45 = vector.shape_cast %44 : vector<1x6x1x256xf32> to vector<6x256xf32>
    %46 = vector.shape_cast %43 : vector<4x256xf32> to vector<4x1x256xf32>
    %47 = vector.shape_cast %45 : vector<6x256xf32> to vector<1x6x256xf32>
    %48 = vector.broadcast %46 : vector<4x1x256xf32> to vector<4x6x256xf32>
    %49 = vector.broadcast %47 : vector<1x6x256xf32> to vector<4x6x256xf32>
    %50 = arith.mulf %48, %49 : vector<4x6x256xf32>
    %51 = arith.addf %37, %50 : vector<4x6x256xf32>
    %c367_i32 = arith.constant 367 : i32
    %52 = tpu.dynamic_rotate %1 by %c367_i32 dim 1 : vector<4x384xf32>, i32 -> vector<4x384xf32>
    %53 = vector.extract_strided_slice %52 {offsets = [0, 0], sizes = [4, 256], strides = [1, 1]} : vector<4x384xf32> to vector<4x256xf32>
    %c0_24 = arith.constant 0 : index
    %c0_25 = arith.constant 0 : index
    %c4 = arith.constant 4 : index
    %c0_26 = arith.constant 0 : index
    %54 = vector.load %arg3[%c0_24, %c0_25, %c4, %c0_26] : memref<1x6x9x256xf32, #tpu.memory_space<vmem>>, vector<1x6x1x256xf32>
    %55 = vector.shape_cast %54 : vector<1x6x1x256xf32> to vector<6x256xf32>
    %56 = vector.shape_cast %53 : vector<4x256xf32> to vector<4x1x256xf32>
    %57 = vector.shape_cast %55 : vector<6x256xf32> to vector<1x6x256xf32>
    %58 = vector.broadcast %56 : vector<4x1x256xf32> to vector<4x6x256xf32>
    %59 = vector.broadcast %57 : vector<1x6x256xf32> to vector<4x6x256xf32>
    %60 = arith.mulf %58, %59 : vector<4x6x256xf32>
    %61 = arith.addf %51, %60 : vector<4x6x256xf32>
    %c366_i32 = arith.constant 366 : i32
    %62 = tpu.dynamic_rotate %1 by %c366_i32 dim 1 : vector<4x384xf32>, i32 -> vector<4x384xf32>
    %63 = vector.extract_strided_slice %62 {offsets = [0, 0], sizes = [4, 256], strides = [1, 1]} : vector<4x384xf32> to vector<4x256xf32>
    %c2_27 = arith.constant 2 : index
    %c0_28 = arith.constant 0 : index
    %c0_29 = arith.constant 0 : index
    %64 = vector.load %arg4[%c2_27, %c0_28, %c0_29] : memref<3x1x256xf32, #tpu.memory_space<vmem>>, vector<1x1x256xf32>
    %65 = vector.shape_cast %64 : vector<1x1x256xf32> to vector<1x256xf32>
    %66 = vector.broadcast %65 : vector<1x256xf32> to vector<4x256xf32>
    %67 = arith.mulf %63, %66 : vector<4x256xf32>
    %c0_30 = arith.constant 0 : index
    %c0_31 = arith.constant 0 : index
    %c5 = arith.constant 5 : index
    %c0_32 = arith.constant 0 : index
    %68 = vector.load %arg3[%c0_30, %c0_31, %c5, %c0_32] : memref<1x6x9x256xf32, #tpu.memory_space<vmem>>, vector<1x6x1x256xf32>
    %69 = vector.shape_cast %68 : vector<1x6x1x256xf32> to vector<6x256xf32>
    %70 = vector.shape_cast %67 : vector<4x256xf32> to vector<4x1x256xf32>
    %71 = vector.shape_cast %69 : vector<6x256xf32> to vector<1x6x256xf32>
    %72 = vector.broadcast %70 : vector<4x1x256xf32> to vector<4x6x256xf32>
    %73 = vector.broadcast %71 : vector<1x6x256xf32> to vector<4x6x256xf32>
    %74 = arith.mulf %72, %73 : vector<4x6x256xf32>
    %75 = arith.addf %61, %74 : vector<4x6x256xf32>
    %c352_i32 = arith.constant 352 : i32
    %76 = tpu.dynamic_rotate %1 by %c352_i32 dim 1 : vector<4x384xf32>, i32 -> vector<4x384xf32>
    %77 = vector.extract_strided_slice %76 {offsets = [0, 0], sizes = [4, 256], strides = [1, 1]} : vector<4x384xf32> to vector<4x256xf32>
    %c0_33 = arith.constant 0 : index
    %c0_34 = arith.constant 0 : index
    %c0_35 = arith.constant 0 : index
    %78 = vector.load %arg4[%c0_33, %c0_34, %c0_35] : memref<3x1x256xf32, #tpu.memory_space<vmem>>, vector<1x1x256xf32>
    %79 = vector.shape_cast %78 : vector<1x1x256xf32> to vector<1x256xf32>
    %80 = vector.broadcast %79 : vector<1x256xf32> to vector<4x256xf32>
    %81 = arith.mulf %77, %80 : vector<4x256xf32>
    %c0_36 = arith.constant 0 : index
    %c0_37 = arith.constant 0 : index
    %c6 = arith.constant 6 : index
    %c0_38 = arith.constant 0 : index
    %82 = vector.load %arg3[%c0_36, %c0_37, %c6, %c0_38] : memref<1x6x9x256xf32, #tpu.memory_space<vmem>>, vector<1x6x1x256xf32>
    %83 = vector.shape_cast %82 : vector<1x6x1x256xf32> to vector<6x256xf32>
    %84 = vector.shape_cast %81 : vector<4x256xf32> to vector<4x1x256xf32>
    %85 = vector.shape_cast %83 : vector<6x256xf32> to vector<1x6x256xf32>
    %86 = vector.broadcast %84 : vector<4x1x256xf32> to vector<4x6x256xf32>
    %87 = vector.broadcast %85 : vector<1x6x256xf32> to vector<4x6x256xf32>
    %88 = arith.mulf %86, %87 : vector<4x6x256xf32>
    %89 = arith.addf %75, %88 : vector<4x6x256xf32>
    %c351_i32 = arith.constant 351 : i32
    %90 = tpu.dynamic_rotate %1 by %c351_i32 dim 1 : vector<4x384xf32>, i32 -> vector<4x384xf32>
    %91 = vector.extract_strided_slice %90 {offsets = [0, 0], sizes = [4, 256], strides = [1, 1]} : vector<4x384xf32> to vector<4x256xf32>
    %c0_39 = arith.constant 0 : index
    %c0_40 = arith.constant 0 : index
    %c7 = arith.constant 7 : index
    %c0_41 = arith.constant 0 : index
    %92 = vector.load %arg3[%c0_39, %c0_40, %c7, %c0_41] : memref<1x6x9x256xf32, #tpu.memory_space<vmem>>, vector<1x6x1x256xf32>
    %93 = vector.shape_cast %92 : vector<1x6x1x256xf32> to vector<6x256xf32>
    %94 = vector.shape_cast %91 : vector<4x256xf32> to vector<4x1x256xf32>
    %95 = vector.shape_cast %93 : vector<6x256xf32> to vector<1x6x256xf32>
    %96 = vector.broadcast %94 : vector<4x1x256xf32> to vector<4x6x256xf32>
    %97 = vector.broadcast %95 : vector<1x6x256xf32> to vector<4x6x256xf32>
    %98 = arith.mulf %96, %97 : vector<4x6x256xf32>
    %99 = arith.addf %89, %98 : vector<4x6x256xf32>
    %c350_i32 = arith.constant 350 : i32
    %100 = tpu.dynamic_rotate %1 by %c350_i32 dim 1 : vector<4x384xf32>, i32 -> vector<4x384xf32>
    %101 = vector.extract_strided_slice %100 {offsets = [0, 0], sizes = [4, 256], strides = [1, 1]} : vector<4x384xf32> to vector<4x256xf32>
    %c2_42 = arith.constant 2 : index
    %c0_43 = arith.constant 0 : index
    %c0_44 = arith.constant 0 : index
    %102 = vector.load %arg4[%c2_42, %c0_43, %c0_44] : memref<3x1x256xf32, #tpu.memory_space<vmem>>, vector<1x1x256xf32>
    %103 = vector.shape_cast %102 : vector<1x1x256xf32> to vector<1x256xf32>
    %104 = vector.broadcast %103 : vector<1x256xf32> to vector<4x256xf32>
    %105 = arith.mulf %101, %104 : vector<4x256xf32>
    %c0_45 = arith.constant 0 : index
    %c0_46 = arith.constant 0 : index
    %c8 = arith.constant 8 : index
    %c0_47 = arith.constant 0 : index
    %106 = vector.load %arg3[%c0_45, %c0_46, %c8, %c0_47] : memref<1x6x9x256xf32, #tpu.memory_space<vmem>>, vector<1x6x1x256xf32>
    %107 = vector.shape_cast %106 : vector<1x6x1x256xf32> to vector<6x256xf32>
    %108 = vector.shape_cast %105 : vector<4x256xf32> to vector<4x1x256xf32>
    %109 = vector.shape_cast %107 : vector<6x256xf32> to vector<1x6x256xf32>
    %110 = vector.broadcast %108 : vector<4x1x256xf32> to vector<4x6x256xf32>
    %111 = vector.broadcast %109 : vector<1x6x256xf32> to vector<4x6x256xf32>
    %112 = arith.mulf %110, %111 : vector<4x6x256xf32>
    %113 = arith.addf %99, %112 : vector<4x6x256xf32>
    %c0_48 = arith.constant 0 : index
    %c0_49 = arith.constant 0 : index
    %c0_50 = arith.constant 0 : index
    %114 = vector.load %arg5[%c0_48, %c0_49, %c0_50] : memref<4x8x6xf32, #tpu.memory_space<vmem>>, vector<1x8x6xf32>
    %115 = vector.shape_cast %114 : vector<1x8x6xf32> to vector<8x6xf32>
    %116 = vector.extract_strided_slice %113 {offsets = [0, 0, 0], sizes = [1, 6, 256], strides = [1, 1, 1]} : vector<4x6x256xf32> to vector<1x6x256xf32>
    %117 = vector.shape_cast %116 : vector<1x6x256xf32> to vector<6x256xf32>
    %cst = arith.constant dense<0.000000e+00> : vector<8x256xf32>
    %118 = tpu.matmul %115, %117, %cst {dimension_numbers = #tpu.dot_dimension_numbers<[1], [0], [0], [1], [0, 0, 1, 1], [], []>} : vector<8x6xf32>, vector<6x256xf32>, vector<8x256xf32> -> vector<8x256xf32>
    %c1_51 = arith.constant 1 : index
    %c0_52 = arith.constant 0 : index
    %c0_53 = arith.constant 0 : index
    %119 = vector.load %arg5[%c1_51, %c0_52, %c0_53] : memref<4x8x6xf32, #tpu.memory_space<vmem>>, vector<1x8x6xf32>
    %120 = vector.shape_cast %119 : vector<1x8x6xf32> to vector<8x6xf32>
    %121 = vector.extract_strided_slice %113 {offsets = [1, 0, 0], sizes = [1, 6, 256], strides = [1, 1, 1]} : vector<4x6x256xf32> to vector<1x6x256xf32>
    %122 = vector.shape_cast %121 : vector<1x6x256xf32> to vector<6x256xf32>
    %cst_54 = arith.constant dense<0.000000e+00> : vector<8x256xf32>
    %123 = tpu.matmul %120, %122, %cst_54 {dimension_numbers = #tpu.dot_dimension_numbers<[1], [0], [0], [1], [0, 0, 1, 1], [], []>} : vector<8x6xf32>, vector<6x256xf32>, vector<8x256xf32> -> vector<8x256xf32>
    %124 = arith.addf %118, %123 : vector<8x256xf32>
    %c2_55 = arith.constant 2 : index
    %c0_56 = arith.constant 0 : index
    %c0_57 = arith.constant 0 : index
    %125 = vector.load %arg5[%c2_55, %c0_56, %c0_57] : memref<4x8x6xf32, #tpu.memory_space<vmem>>, vector<1x8x6xf32>
    %126 = vector.shape_cast %125 : vector<1x8x6xf32> to vector<8x6xf32>
    %127 = vector.extract_strided_slice %113 {offsets = [2, 0, 0], sizes = [1, 6, 256], strides = [1, 1, 1]} : vector<4x6x256xf32> to vector<1x6x256xf32>
    %128 = vector.shape_cast %127 : vector<1x6x256xf32> to vector<6x256xf32>
    %cst_58 = arith.constant dense<0.000000e+00> : vector<8x256xf32>
    %129 = tpu.matmul %126, %128, %cst_58 {dimension_numbers = #tpu.dot_dimension_numbers<[1], [0], [0], [1], [0, 0, 1, 1], [], []>} : vector<8x6xf32>, vector<6x256xf32>, vector<8x256xf32> -> vector<8x256xf32>
    %130 = arith.addf %124, %129 : vector<8x256xf32>
    %c3_59 = arith.constant 3 : index
    %c0_60 = arith.constant 0 : index
    %c0_61 = arith.constant 0 : index
    %131 = vector.load %arg5[%c3_59, %c0_60, %c0_61] : memref<4x8x6xf32, #tpu.memory_space<vmem>>, vector<1x8x6xf32>
    %132 = vector.shape_cast %131 : vector<1x8x6xf32> to vector<8x6xf32>
    %133 = vector.extract_strided_slice %113 {offsets = [3, 0, 0], sizes = [1, 6, 256], strides = [1, 1, 1]} : vector<4x6x256xf32> to vector<1x6x256xf32>
    %134 = vector.shape_cast %133 : vector<1x6x256xf32> to vector<6x256xf32>
    %cst_62 = arith.constant dense<0.000000e+00> : vector<8x256xf32>
    %135 = tpu.matmul %132, %134, %cst_62 {dimension_numbers = #tpu.dot_dimension_numbers<[1], [0], [0], [1], [0, 0, 1, 1], [], []>} : vector<8x6xf32>, vector<6x256xf32>, vector<8x256xf32> -> vector<8x256xf32>
    %136 = arith.addf %130, %135 : vector<8x256xf32>
    %c0_63 = arith.constant 0 : index
    %c0_64 = arith.constant 0 : index
    %137 = vector.load %arg6[%c0_63, %c0_64] : memref<8x1xf32, #tpu.memory_space<vmem>>, vector<8x1xf32>
    %138 = vector.broadcast %137 : vector<8x1xf32> to vector<8x256xf32>
    %139 = arith.addf %136, %138 : vector<8x256xf32>
    %c0_65 = arith.constant 0 : index
    %c0_66 = arith.constant 0 : index
    %c0_67 = arith.constant 0 : index
    %140 = vector.load %arg7[%c0_65, %c0_66, %c0_67] : memref<1x8x256xf32, #tpu.memory_space<vmem>>, vector<1x8x256xf32>
    %141 = vector.shape_cast %140 : vector<1x8x256xf32> to vector<8x256xf32>
    %142 = vector.shape_cast %139 : vector<8x256xf32> to vector<1x8x256xf32>
    tpu.vector_store %arg7[%c0_65, %c0_66, %c0_67], %142 {strides = array<i32>} : memref<1x8x256xf32, #tpu.memory_space<vmem>>, vector<1x8x256xf32>,
    return
  }
  func.func @transform_0(%arg0: i32, %arg1: i32) -> (i32, i32, i32) {
    %c1_i32 = arith.constant 1 : i32
    %0 = arith.muli %arg0, %c1_i32 : i32
    %1 = arith.addi %0, %arg1 : i32
    %c0_i32 = arith.constant 0 : i32
    %c0_i32_0 = arith.constant 0 : i32
    %c0_i32_1 = arith.constant 0 : i32
    return %1, %c0_i32, %c0_i32_0 : i32, i32, i32
  }
  func.func @transform_1(%arg0: i32, %arg1: i32) -> (i32, i32, i32, i32) {
    %c0_i32 = arith.constant 0 : i32
    %c0_i32_0 = arith.constant 0 : i32
    %c0_i32_1 = arith.constant 0 : i32
    return %arg0, %c0_i32, %c0_i32_0, %arg1 : i32, i32, i32, i32
  }
  func.func @transform_2(%arg0: i32, %arg1: i32) -> (i32, i32, i32) {
    %c0_i32 = arith.constant 0 : i32
    %c0_i32_0 = arith.constant 0 : i32
    %c0_i32_1 = arith.constant 0 : i32
    %c0_i32_2 = arith.constant 0 : i32
    return %c0_i32, %c0_i32_0, %c0_i32_1 : i32, i32, i32
  }
  func.func @transform_3(%arg0: i32, %arg1: i32) -> (i32, i32, i32) {
    %c0_i32 = arith.constant 0 : i32
    %c0_i32_0 = arith.constant 0 : i32
    %c0_i32_1 = arith.constant 0 : i32
    %c0_i32_2 = arith.constant 0 : i32
    return %c0_i32, %c0_i32_0, %c0_i32_1 : i32, i32, i32
  }
  func.func @transform_4(%arg0: i32, %arg1: i32) -> (i32, i32) {
    %c0_i32 = arith.constant 0 : i32
    %c0_i32_0 = arith.constant 0 : i32
    %c0_i32_1 = arith.constant 0 : i32
    return %c0_i32, %c0_i32_0 : i32, i32
  }
  func.func @transform_5(%arg0: i32, %arg1: i32) -> (i32, i32, i32) {
    %c0_i32 = arith.constant 0 : i32
    %c0_i32_0 = arith.constant 0 : i32
    return %arg0, %c0_i32, %arg1 : i32, i32, i32
  }
}

</mosaic_0001>

<bundles_post_ra>
// kernel: tpu_custom_call.1
= control target key start
LH: loop header
LB: loop body
LE: loop exit
PB: predicated region body
PF: predicated region fallthrough
CT: control target
= control target key end

     0   :  { %10 = vsyncpa [#allocation3], 0  ;;  %s2700_s0 = inlined_call_operand.vmem [shape: f32[2,4,384], index: 0, kind: input, shape index: {}]   ;;  %s2701_s1 = inlined_call_operand.vmem [shape: f32[2,6,9,256], index: 1, kind: input, shape index: {}]   ;;  %s2702_s2 = inlined_call_operand.vmem [shape: f32[3,1,256], index: 2, kind: input, shape index: {}]   ;;  %s2703_s3 = inlined_call_operand.vmem [shape: f32[4,8,6], index: 3, kind: input, shape index: {}]   ;;  %s2704_s4 = inlined_call_operand.vmem [shape: f32[8,1], index: 4, kind: input, shape index: {}]   ;;  %s2705_s5 = inlined_call_operand.hbm [shape: f32[2,8,256], index: 5, kind: output, shape index: {}]  }
   0x1   :  { %12 = vsyncpa [#allocation3 + $0x1], 0  ;;  %s1997_s18 = smov 0   ;;  %s1999_s19 = smov 0  }
   0x2   :  { %s2001_s20 = smov 0   ;;  %s2003_s21 = smov 0  }
   0x3   :  { %s2005_s22 = smov 0   ;;  %s2007_s23 = smov 0  }
   0x4 LB: > { %s1724_s24 = sadd.s32 4294967295, %s1956_s23   ;;  %s1725_s25 = sadd.s32 4294967294, %s1956_s23   ;;  %s1956_s23 = sphi %s2007_s23, %s18_s23   ;;  %s1952_s22 = sphi %s2005_s22, %s2812_s22   ;;  %s1948_s21 = sphi %s2003_s21, %s2811_s21   ;;  %s1944_s20 = sphi %s2001_s20, %s2810_s20   ;;  %s1940_s19 = sphi %s1999_s19, %s2809_s19   ;;  %s1936_s18 = sphi %s1997_s18, %s2808_s18  }
   0x5   : > { %s30_s26 = sadd.s32 1, %s1952_s22  ;;  %s158_s27 = sadd.s32 1, %s1944_s20 }
   0x6   : > { %p32_p0 = scmp.ge.s32.totalorder %s30_s26, 2  ;;  %p168_p1 = scmp.ne.s32.totalorder %s1944_s20, %s1940_s19 }
   0x7   : > { %p169_p2 = scmp.eq.s32.totalorder %s1724_s24, 1  ;;  %p174_p3 = scmp.ne.s32.totalorder %s1940_s19, %s1936_s18 }
   0x8   : > { %s2814_s26 = smov (%p32_p0, %s30_s26), 0  ;;  %p175_p5 = scmp.eq.s32.totalorder %s1725_s25, 1 }
   0x9   : > { %p2037_p4 = por %p169_p2, %p168_p1  ;;  %s153_s29 = ssub.s32 %s1952_s22, %s2814_s26 }
   0xa   : > { %p1728_p6 = scmp.ge.s32.totalorder %s1956_s23, 1  ;;  %p156_p7 = scmp.eq.s32.totalorder %s153_s29, 0 }
   0xb   : > { %p2044_p8 = por %p175_p5, %p174_p3  ;;  %p225_p9 = scmp.lt.s32.totalorder %s1956_s23, 3 }
   0xc   : > { %s2050_s6 = scalar_select %p156_p7, %s1944_s20, %s158_s27  }
   0xd   : > { %p226_p10 = pnand %p1728_p6, %p225_p9 }
   0xf   : > { %229 = sbr.rel (%p226_p10) target bundleno = 826 (0x33a), region = 40 }
  0x14   : > { %p264_p11 = scmp.lt.s32.totalorder %s1948_s21, 1  ;;  %s1958_s16 = smov 127   ;;  %vm309_vm2 = vcmask 1041409   ;;  %vm290_vm3 = vcmask 1043456   ;;  %vm312_vm4 = vcmask 1042434   ;;  %vm315_vm6 = vcmask 1043459  }
  0x15   : > { %s1959_s17 = smov 126   ;;  %s1960_s24 = smov 112   ;;  %vm307_vm7 = vcmask 1040384   ;;  %vm1405_vm13 = vcmask 1045504   ;;  %vm1401_vm14 = vcmask 48128  }
  0x16   : > { %s2054_s7 = scalar_select %p264_p11, %s1948_s21, 1 }
  0x17   : > { %s1961_s25 = smov 111   ;;  %s1962_s27 = smov 110  }
  0x18   : > { %s1812_s8 = smul.u32 192, %s2054_s7  ;;  %s1963_s29 = smov 96  }
  0x19   : > { %s1811_s12 = smul.u32 12, %s2054_s7  ;;  %s1964_s7 = smov 95  }
  0x1a   : > { %s2060_s11 = scalar_lea.vmem %s2701_s1, %s1812_s8  ;;  %s1965_s8 = smov 94  }
  0x1b   : > { %v294_v0 = vld [vmem:[%s2060_s11] ss:$8 sm:$0x3]  ;;  %s268_s15 = scalar_lea.vmem %s2700_s0, %s1811_s12  ;;  %v1737_v16 = vld [vmem:[%s2060_s11 + $0x1] ss:$8 sm:$0x3] }
  0x1c   : > { %v1732_v1 = vld [vmem:[%s2060_s11 + $0x20] ss:$8 sm:$0x3]  ;;  %340 = vst [vmem:[#allocation1] ss:$9 sm:$0xff] %v294_v0  ;;  %s1810_s10 = sshll.u32 %s1948_s21, 4 }
  0x1d   : > { %v1733_v2 = vld [vmem:[%s2060_s11 + $0x40] ss:$8 sm:$0x3]  ;;  %342 = vst [vmem:[#allocation1 + $0x1] ss:$9 sm:$0xff] %v1732_v1 }
  0x1e   : > { %v1734_v3 = vld [vmem:[%s2060_s11 + $0x60] ss:$8 sm:$0x3]  ;;  %344 = vst [vmem:[#allocation1 + $0x2] ss:$9 sm:$0xff] %v1733_v2 }
  0x1f   : > { %v1735_v4 = vld [vmem:[%s2060_s11 + $0x80] ss:$8 sm:$0x3]  ;;  %346 = vst [vmem:[#allocation1 + $0x3] ss:$9 sm:$0xff] %v1734_v3 }
  0x20   : > { %v1736_v5 = vld [vmem:[%s2060_s11 + $0xa0] ss:$8 sm:$0x3]  ;;  %348 = vst [vmem:[#allocation1 + $0x4] ss:$9 sm:$0xff] %v1735_v4 }
  0x21   : > { %350 = vst [vmem:[#allocation1 + $0x5] ss:$9 sm:$0xff] %v1736_v5  ;;  %v2084_v12 = vld [vmem:[%s268_s15] sm:$0xff]  ;;  %v2086_v13 = vld [vmem:[%s268_s15 + $0x8] sm:$0xf] }
  0x22   : > { %v1738_v17 = vld [vmem:[%s2060_s11 + $0x21] ss:$8 sm:$0x3]  ;;  %v1744_v33 = vld [vmem:[%s2060_s11 + $0x2] ss:$8 sm:$0x3] }
  0x23   : > { %v1739_v21 = vld [vmem:[%s2060_s11 + $0x41] ss:$8 sm:$0x3]  ;;  %v1745_v34 = vld [vmem:[%s2060_s11 + $0x22] ss:$8 sm:$0x3] }
  0x24   : > { %v1740_v22 = vld [vmem:[%s2060_s11 + $0x61] ss:$8 sm:$0x3]  ;;  %v1746_v38 = vld [vmem:[%s2060_s11 + $0x42] ss:$8 sm:$0x3] }
  0x25   : > { %v1741_v23 = vld [vmem:[%s2060_s11 + $0x81] ss:$8 sm:$0x3]  ;;  %v1747_v39 = vld [vmem:[%s2060_s11 + $0x62] ss:$8 sm:$0x3] }
  0x26   : > { %v1742_v24 = vld [vmem:[%s2060_s11 + $0xa1] ss:$8 sm:$0x3]  ;;  %v1748_v40 = vld [vmem:[%s2060_s11 + $0x82] ss:$8 sm:$0x3] }
  0x27   : > { %v1749_v41 = vld [vmem:[%s2060_s11 + $0xa2] ss:$8 sm:$0x3]  ;;  %v1750_v50 = vld [vmem:[%s2060_s11 + $0x3] ss:$8 sm:$0x3] }
  0x28   : > { %v2068_v6 = vld [vmem:[#allocation1] sm:$0xff]  ;;  %v2070_v7 = vld [vmem:[#allocation1 + $0x9] sm:$0xff] }
  0x29   : > { %353 = vst [vmem:[#allocation1] ss:$9 sm:$0xff] %v294_v0  ;;  %v1751_v51 = vld [vmem:[%s2060_s11 + $0x23] ss:$8 sm:$0x3] }
  0x2a   : > { %354 = vst [vmem:[#allocation1 + $0x1] ss:$9 sm:$0xff] %v1732_v1  ;;  %v1752_v53 = vld [vmem:[%s2060_s11 + $0x43] ss:$8 sm:$0x3] }
  0x2b   : > { %355 = vst [vmem:[#allocation1 + $0x2] ss:$9 sm:$0xff] %v1733_v2  ;;  %v1753_v56 = vld [vmem:[%s2060_s11 + $0x63] ss:$8 sm:$0x3] }
  0x2c   : > { %356 = vst [vmem:[#allocation1 + $0x3] ss:$9 sm:$0xff] %v1734_v3  ;;  %v1754_v57 = vld [vmem:[%s2060_s11 + $0x83] ss:$8 sm:$0x3] }
  0x2d   : > { %357 = vst [vmem:[#allocation1 + $0x4] ss:$9 sm:$0xff] %v1735_v4  ;;  %v1755_v58 = vld [vmem:[%s2060_s11 + $0xa3] ss:$8 sm:$0x3] }
  0x2e   : > { %358 = vst [vmem:[#allocation1 + $0x5] ss:$9 sm:$0xff] %v1736_v5 }
  0x35   : > { %v2072_v8 = vld [vmem:[#allocation1] sm:$0xff]  ;;  %v2074_v9 = vld [vmem:[#allocation1 + $0x9] sm:$0xff] }
  0x36   : > { %2711 = vst [vmem:[#allocation5_spill] sm:$0xff] %v2074_v9 }
  0x37   : > { %361 = vst [vmem:[#allocation1] ss:$9 sm:$0xff] %v294_v0 }
  0x38   : > { %362 = vst [vmem:[#allocation1 + $0x1] ss:$9 sm:$0xff] %v1732_v1 }
  0x39   : > { %363 = vst [vmem:[#allocation1 + $0x2] ss:$9 sm:$0xff] %v1733_v2 }
  0x3a   : > { %364 = vst [vmem:[#allocation1 + $0x3] ss:$9 sm:$0xff] %v1734_v3 }
  0x3b   : > { %365 = vst [vmem:[#allocation1 + $0x4] ss:$9 sm:$0xff] %v1735_v4 }
  0x3c   : > { %366 = vst [vmem:[#allocation1 + $0x5] ss:$9 sm:$0xff] %v1736_v5 }
  0x43   : > { %v2076_v10 = vld [vmem:[#allocation1] sm:$0xff]  ;;  %v2078_v11 = vld [vmem:[#allocation1 + $0x9] sm:$0xff] }
  0x44   : > { %2712 = vst [vmem:[#allocation6_spill] sm:$0xff] %v2076_v10 }
  0x45   : > { %2713 = vst [vmem:[#allocation7_spill] sm:$0xff] %v2078_v11 }
  0x46   : > { %369 = vst [vmem:[#allocation1] ss:$9 sm:$0xff] %v294_v0 }
  0x47   : > { %370 = vst [vmem:[#allocation1 + $0x1] ss:$9 sm:$0xff] %v1732_v1 }
  0x48   : > { %371 = vst [vmem:[#allocation1 + $0x2] ss:$9 sm:$0xff] %v1733_v2 }
  0x49   : > { %372 = vst [vmem:[#allocation1 + $0x3] ss:$9 sm:$0xff] %v1734_v3  ;;  %v1756_v3 = vld [vmem:[%s2060_s11 + $0x4] ss:$8 sm:$0x3] }
  0x4a   : > { %373 = vst [vmem:[#allocation1 + $0x4] ss:$9 sm:$0xff] %v1735_v4  ;;  %v1757_v4 = vld [vmem:[%s2060_s11 + $0x24] ss:$8 sm:$0x3] }
  0x4b   : > { %374 = vst [vmem:[#allocation1 + $0x5] ss:$9 sm:$0xff] %v1736_v5 }
  0x52   : > { %v2088_v14 = vld [vmem:[#allocation1] sm:$0xff]  ;;  %v2090_v15 = vld [vmem:[#allocation1 + $0x9] sm:$0xff] }
  0x53   : > { %2714 = vst [vmem:[#allocation8_spill] sm:$0xff] %v2088_v14 }
  0x54   : > { %2715 = vst [vmem:[#allocation9_spill] sm:$0xff] %v2090_v15 }
  0x55   : > { %395 = vst [vmem:[#allocation1] ss:$2 sm:$0xff] %v2084_v12 }
  0x56   : > { %397 = vst [vmem:[#allocation1 + $0x10] ss:$2 sm:$0xff] %v2086_v13 }
  0x5c   : > { %v399_v18 = vld.sshfl [vmem:[#allocation1 + $0x8] sm:$0xff pattern:$0x75316420]  ;;  %v398_v19 = vld.sshfl [vmem:[#allocation1] sm:$0xff pattern:$0x75316420] }
  0x5d   : > { %406 = vrot.lane.b32.xlu0 %v399_v18, %s1958_s16  ;;  %v400_v20 = vld.sshfl [vmem:[#allocation1 + $0x10] sm:$0xff pattern:$0x75316420]  ;;  %404 = vrot.lane.b32.xlu2 %v398_v19, %s1958_s16  ;;  %v1759_v19 = vld [vmem:[%s2060_s11 + $0x64] ss:$8 sm:$0x3] }
  0x5e   : > { %459 = vst [vmem:[#allocation1] ss:$9 sm:$0xff] %v1737_v16 }
  0x5f   : > { %461 = vst [vmem:[#allocation1 + $0x1] ss:$9 sm:$0xff] %v1738_v17 }
  0x60   : > { %463 = vst [vmem:[#allocation1 + $0x2] ss:$9 sm:$0xff] %v1739_v21 }
  0x61   : > { %465 = vst [vmem:[#allocation1 + $0x3] ss:$9 sm:$0xff] %v1740_v22 }
  0x62   : > { %467 = vst [vmem:[#allocation1 + $0x4] ss:$9 sm:$0xff] %v1741_v23 }
  0x63   : > { %469 = vst [vmem:[#allocation1 + $0x5] ss:$9 sm:$0xff] %v1742_v24 }
  0x65   : > { %408 = vrot.lane.b32.xlu0 %v400_v20, %s1958_s16  ;;  %v1760_v20 = vld [vmem:[%s2060_s11 + $0x84] ss:$8 sm:$0x3] }
  0x6a   : > { %v2100_v25 = vld [vmem:[#allocation1] sm:$0xff]  ;;  %v2102_v26 = vld [vmem:[#allocation1 + $0x9] sm:$0xff] }
  0x6b   : > { %472 = vst [vmem:[#allocation1] ss:$9 sm:$0xff] %v1737_v16 }
  0x6c   : > { %473 = vst [vmem:[#allocation1 + $0x1] ss:$9 sm:$0xff] %v1738_v17 }
  0x6d   : > { %474 = vst [vmem:[#allocation1 + $0x2] ss:$9 sm:$0xff] %v1739_v21 }
  0x6e   : > { %475 = vst [vmem:[#allocation1 + $0x3] ss:$9 sm:$0xff] %v1740_v22 }
  0x6f   : > { %476 = vst [vmem:[#allocation1 + $0x4] ss:$9 sm:$0xff] %v1741_v23 }
  0x70   : > { %477 = vst [vmem:[#allocation1 + $0x5] ss:$9 sm:$0xff] %v1742_v24 }
  0x77   : > { %v2104_v27 = vld [vmem:[#allocation1] sm:$0xff]  ;;  %v2106_v28 = vld [vmem:[#allocation1 + $0x9] sm:$0xff] }
  0x78   : > { %480 = vst [vmem:[#allocation1] ss:$9 sm:$0xff] %v1737_v16 }
  0x79   : > { %481 = vst [vmem:[#allocation1 + $0x1] ss:$9 sm:$0xff] %v1738_v17 }
  0x7a   : > { %482 = vst [vmem:[#allocation1 + $0x2] ss:$9 sm:$0xff] %v1739_v21 }
  0x7b   : > { %483 = vst [vmem:[#allocation1 + $0x3] ss:$9 sm:$0xff] %v1740_v22 }
  0x7c   : > { %484 = vst [vmem:[#allocation1 + $0x4] ss:$9 sm:$0xff] %v1741_v23 }
  0x7d   : > { %485 = vst [vmem:[#allocation1 + $0x5] ss:$9 sm:$0xff] %v1742_v24 }
  0x84   : > { %v2108_v29 = vld [vmem:[#allocation1] sm:$0xff]  ;;  %v2110_v30 = vld [vmem:[#allocation1 + $0x9] sm:$0xff] }
  0x85   : > { %488 = vst [vmem:[#allocation1] ss:$9 sm:$0xff] %v1737_v16  ;;  %v1758_v16 = vld [vmem:[%s2060_s11 + $0x44] ss:$8 sm:$0x3] }
  0x86   : > { %489 = vst [vmem:[#allocation1 + $0x1] ss:$9 sm:$0xff] %v1738_v17 }
  0x87   : > { %490 = vst [vmem:[#allocation1 + $0x2] ss:$9 sm:$0xff] %v1739_v21  ;;  %v1761_v21 = vld [vmem:[%s2060_s11 + $0xa4] ss:$8 sm:$0x3] }
  0x88   : > { %491 = vst [vmem:[#allocation1 + $0x3] ss:$9 sm:$0xff] %v1740_v22 }
  0x89   : > { %492 = vst [vmem:[#allocation1 + $0x4] ss:$9 sm:$0xff] %v1741_v23 }
  0x8a   : > { %493 = vst [vmem:[#allocation1 + $0x5] ss:$9 sm:$0xff] %v1742_v24 }
  0x91   : > { %v2112_v31 = vld [vmem:[#allocation1] sm:$0xff]  ;;  %v2114_v32 = vld [vmem:[#allocation1 + $0x9] sm:$0xff] }
  0x92   : > { %520 = vst [vmem:[#allocation1] ss:$2 sm:$0xff] %v2084_v12 }
  0x93   : > { %522 = vst [vmem:[#allocation1 + $0x10] ss:$2 sm:$0xff] %v2086_v13 }
  0x99   : > { %v524_v35 = vld.sshfl [vmem:[#allocation1 + $0x8] sm:$0xff pattern:$0x75316420]  ;;  %v523_v36 = vld.sshfl [vmem:[#allocation1] sm:$0xff pattern:$0x75316420] }
  0x9a   : > { %531 = vrot.lane.b32.xlu1 %v524_v35, %s1959_s17  ;;  %v525_v37 = vld.sshfl [vmem:[#allocation1 + $0x10] sm:$0xff pattern:$0x75316420]  ;;  %529 = vrot.lane.b32.xlu2 %v523_v36, %s1959_s17 }
  0x9b   : > { %591 = vst [vmem:[#allocation1] ss:$9 sm:$0xff] %v1744_v33 }
  0x9c   : > { %593 = vst [vmem:[#allocation1 + $0x1] ss:$9 sm:$0xff] %v1745_v34 }
  0x9d   : > { %595 = vst [vmem:[#allocation1 + $0x2] ss:$9 sm:$0xff] %v1746_v38 }
  0x9e   : > { %597 = vst [vmem:[#allocation1 + $0x3] ss:$9 sm:$0xff] %v1747_v39 }
  0x9f   : > { %599 = vst [vmem:[#allocation1 + $0x4] ss:$9 sm:$0xff] %v1748_v40 }
  0xa0   : > { %601 = vst [vmem:[#allocation1 + $0x5] ss:$9 sm:$0xff] %v1749_v41 }
  0xa2   : > { %533 = vrot.lane.b32.xlu1 %v525_v37, %s1959_s17 }
  0xa7   : > { %v2124_v42 = vld [vmem:[#allocation1] sm:$0xff]  ;;  %v2126_v43 = vld [vmem:[#allocation1 + $0x9] sm:$0xff] }
  0xa8   : > { %604 = vst [vmem:[#allocation1] ss:$9 sm:$0xff] %v1744_v33 }
  0xa9   : > { %605 = vst [vmem:[#allocation1 + $0x1] ss:$9 sm:$0xff] %v1745_v34 }
  0xaa   : > { %606 = vst [vmem:[#allocation1 + $0x2] ss:$9 sm:$0xff] %v1746_v38 }
  0xab   : > { %607 = vst [vmem:[#allocation1 + $0x3] ss:$9 sm:$0xff] %v1747_v39 }
  0xac   : > { %608 = vst [vmem:[#allocation1 + $0x4] ss:$9 sm:$0xff] %v1748_v40 }
  0xad   : > { %609 = vst [vmem:[#allocation1 + $0x5] ss:$9 sm:$0xff] %v1749_v41 }
  0xb4   : > { %v2128_v44 = vld [vmem:[#allocation1] sm:$0xff]  ;;  %v2130_v45 = vld [vmem:[#allocation1 + $0x9] sm:$0xff] }
  0xb5   : > { %612 = vst [vmem:[#allocation1] ss:$9 sm:$0xff] %v1744_v33 }
  0xb6   : > { %613 = vst [vmem:[#allocation1 + $0x1] ss:$9 sm:$0xff] %v1745_v34 }
  0xb7   : > { %614 = vst [vmem:[#allocation1 + $0x2] ss:$9 sm:$0xff] %v1746_v38 }
  0xb8   : > { %615 = vst [vmem:[#allocation1 + $0x3] ss:$9 sm:$0xff] %v1747_v39 }
  0xb9   : > { %616 = vst [vmem:[#allocation1 + $0x4] ss:$9 sm:$0xff] %v1748_v40 }
  0xba   : > { %617 = vst [vmem:[#allocation1 + $0x5] ss:$9 sm:$0xff] %v1749_v41 }
  0xc1   : > { %v2132_v46 = vld [vmem:[#allocation1] sm:$0xff]  ;;  %v2134_v47 = vld [vmem:[#allocation1 + $0x9] sm:$0xff] }
  0xc2   : > { %620 = vst [vmem:[#allocation1] ss:$9 sm:$0xff] %v1744_v33 }
  0xc3   : > { %621 = vst [vmem:[#allocation1 + $0x1] ss:$9 sm:$0xff] %v1745_v34 }
  0xc4   : > { %622 = vst [vmem:[#allocation1 + $0x2] ss:$9 sm:$0xff] %v1746_v38  ;;  %v1762_v38 = vld [vmem:[%s2060_s11 + $0x5] ss:$8 sm:$0x3] }
  0xc5   : > { %623 = vst [vmem:[#allocation1 + $0x3] ss:$9 sm:$0xff] %v1747_v39  ;;  %v1763_v39 = vld [vmem:[%s2060_s11 + $0x25] ss:$8 sm:$0x3] }
  0xc6   : > { %624 = vst [vmem:[#allocation1 + $0x4] ss:$9 sm:$0xff] %v1748_v40 }
  0xc7   : > { %625 = vst [vmem:[#allocation1 + $0x5] ss:$9 sm:$0xff] %v1749_v41  ;;  %v1764_v41 = vld [vmem:[%s2060_s11 + $0x45] ss:$8 sm:$0x3] }
  0xce   : > { %v2136_v48 = vld [vmem:[#allocation1 + $0x9] sm:$0xff]  ;;  %v2138_v49 = vld [vmem:[#allocation1] sm:$0xff] }
  0xcf   : > { %654 = vst [vmem:[#allocation1 + $0x10] ss:$2 sm:$0xff] %v2086_v13 }
  0xd0   : > { %652 = vst [vmem:[#allocation1] ss:$2 sm:$0xff] %v2084_v12 }
  0xd6   : > { %v657_v52 = vld.sshfl [vmem:[#allocation1 + $0x10] sm:$0xff pattern:$0x75316420] }
  0xd7   : > { %665 = vrot.lane.b32.xlu1 %v657_v52, %s1960_s24  ;;  %v656_v54 = vld.sshfl [vmem:[#allocation1 + $0x8] sm:$0xff pattern:$0x75316420]  ;;  %v655_v55 = vld.sshfl [vmem:[#allocation1] sm:$0xff pattern:$0x75316420] }
  0xd8   : > { %663 = vrot.lane.b32.xlu0 %v656_v54, %s1960_s24  ;;  %716 = vst [vmem:[#allocation1] ss:$9 sm:$0xff] %v1750_v50  ;;  %661 = vrot.lane.b32.xlu2 %v655_v55, %s1960_s24  ;;  %v1765_v52 = vld [vmem:[%s2060_s11 + $0x65] ss:$8 sm:$0x3] }
  0xd9   : > { %718 = vst [vmem:[#allocation1 + $0x1] ss:$9 sm:$0xff] %v1751_v51  ;;  %v1767_v54 = vld [vmem:[%s2060_s11 + $0xa5] ss:$8 sm:$0x3] }
  0xda   : > { %720 = vst [vmem:[#allocation1 + $0x2] ss:$9 sm:$0xff] %v1752_v53 }
  0xdb   : > { %722 = vst [vmem:[#allocation1 + $0x3] ss:$9 sm:$0xff] %v1753_v56 }
  0xdc   : > { %724 = vst [vmem:[#allocation1 + $0x4] ss:$9 sm:$0xff] %v1754_v57 }
  0xdd   : > { %726 = vst [vmem:[#allocation1 + $0x5] ss:$9 sm:$0xff] %v1755_v58 }
  0xe4   : > { %v2148_v59 = vld [vmem:[#allocation1] sm:$0xff]  ;;  %v2150_v60 = vld [vmem:[#allocation1 + $0x9] sm:$0xff] }
  0xe5   : > { %2716 = vst [vmem:[#allocation10_spill] sm:$0xff] %v2148_v59 }
  0xe6   : > { %2717 = vst [vmem:[#allocation11_spill] sm:$0xff] %v2150_v60 }
  0xe7   : > { %729 = vst [vmem:[#allocation1] ss:$9 sm:$0xff] %v1750_v50 }
  0xe8   : > { %730 = vst [vmem:[#allocation1 + $0x1] ss:$9 sm:$0xff] %v1751_v51 }
  0xe9   : > { %731 = vst [vmem:[#allocation1 + $0x2] ss:$9 sm:$0xff] %v1752_v53 }
  0xea   : > { %732 = vst [vmem:[#allocation1 + $0x3] ss:$9 sm:$0xff] %v1753_v56 }
  0xeb   : > { %733 = vst [vmem:[#allocation1 + $0x4] ss:$9 sm:$0xff] %v1754_v57 }
  0xec   : > { %734 = vst [vmem:[#allocation1 + $0x5] ss:$9 sm:$0xff] %v1755_v58 }
  0xf3   : > { %v2152_v61 = vld [vmem:[#allocation1] sm:$0xff]  ;;  %v2154_v62 = vld [vmem:[#allocation1 + $0x9] sm:$0xff] }
  0xf4   : > { %2718 = vst [vmem:[#allocation12_spill] sm:$0xff] %v2152_v61 }
  0xf5   : > { %2719 = vst [vmem:[#allocation13_spill] sm:$0xff] %v2154_v62 }
  0xf6   : > { %737 = vst [vmem:[#allocation1] ss:$9 sm:$0xff] %v1750_v50 }
  0xf7   : > { %738 = vst [vmem:[#allocation1 + $0x1] ss:$9 sm:$0xff] %v1751_v51 }
  0xf8   : > { %739 = vst [vmem:[#allocation1 + $0x2] ss:$9 sm:$0xff] %v1752_v53 }
  0xf9   : > { %740 = vst [vmem:[#allocation1 + $0x3] ss:$9 sm:$0xff] %v1753_v56 }
  0xfa   : > { %741 = vst [vmem:[#allocation1 + $0x4] ss:$9 sm:$0xff] %v1754_v57 }
  0xfb   : > { %742 = vst [vmem:[#allocation1 + $0x5] ss:$9 sm:$0xff] %v1755_v58 }
 0x102   : > { %v2156_v63 = vld [vmem:[#allocation1] sm:$0xff]  ;;  %v2158_v0 = vld [vmem:[#allocation1 + $0x9] sm:$0xff] }
 0x103   : > { %745 = vst [vmem:[#allocation1] ss:$9 sm:$0xff] %v1750_v50 }
 0x104   : > { %746 = vst [vmem:[#allocation1 + $0x1] ss:$9 sm:$0xff] %v1751_v51 }
 0x105   : > { %747 = vst [vmem:[#allocation1 + $0x2] ss:$9 sm:$0xff] %v1752_v53  ;;  %v1766_v53 = vld [vmem:[%s2060_s11 + $0x85] ss:$8 sm:$0x3] }
 0x106   : > { %748 = vst [vmem:[#allocation1 + $0x3] ss:$9 sm:$0xff] %v1753_v56 }
 0x107   : > { %749 = vst [vmem:[#allocation1 + $0x4] ss:$9 sm:$0xff] %v1754_v57 }
 0x108   : > { %750 = vst [vmem:[#allocation1 + $0x5] ss:$9 sm:$0xff] %v1755_v58 }
 0x10f   : > { %v2160_v1 = vld [vmem:[#allocation1 + $0x9] sm:$0xff]  ;;  %v2162_v2 = vld [vmem:[#allocation1] sm:$0xff] }
 0x110   : > { %779 = vst [vmem:[#allocation1 + $0x10] ss:$2 sm:$0xff] %v2086_v13 }
 0x111   : > { %777 = vst [vmem:[#allocation1] ss:$2 sm:$0xff] %v2084_v12 }
 0x117   : > { %v782_v5 = vld.sshfl [vmem:[#allocation1 + $0x10] sm:$0xff pattern:$0x75316420] }
 0x118   : > { %790 = vrot.lane.b32.xlu1 %v782_v5, %s1961_s25  ;;  %v781_v17 = vld.sshfl [vmem:[#allocation1 + $0x8] sm:$0xff pattern:$0x75316420]  ;;  %v780_v18 = vld.sshfl [vmem:[#allocation1] sm:$0xff pattern:$0x75316420] }
 0x119   : > { %788 = vrot.lane.b32.xlu0 %v781_v17, %s1961_s25  ;;  %839 = vst [vmem:[#allocation1] ss:$9 sm:$0xff] %v1756_v3  ;;  %v1768_v17 = vld [vmem:[%s2060_s11 + $0x6] ss:$8 sm:$0x3] }
 0x11a   : > { %841 = vst [vmem:[#allocation1 + $0x1] ss:$9 sm:$0xff] %v1757_v4 }
 0x11b   : > { %843 = vst [vmem:[#allocation1 + $0x2] ss:$9 sm:$0xff] %v1758_v16 }
 0x11c   : > { %845 = vst [vmem:[#allocation1 + $0x3] ss:$9 sm:$0xff] %v1759_v19 }
 0x11d   : > { %847 = vst [vmem:[#allocation1 + $0x4] ss:$9 sm:$0xff] %v1760_v20 }
 0x11e   : > { %849 = vst [vmem:[#allocation1 + $0x5] ss:$9 sm:$0xff] %v1761_v21 }
 0x120   : > { %786 = vrot.lane.b32.xlu1 %v780_v18, %s1961_s25  ;;  %v1769_v18 = vld [vmem:[%s2060_s11 + $0x26] ss:$8 sm:$0x3] }
 0x125   : > { %v2172_v22 = vld [vmem:[#allocation1] sm:$0xff]  ;;  %v2174_v23 = vld [vmem:[#allocation1 + $0x9] sm:$0xff] }
 0x126   : > { %852 = vst [vmem:[#allocation1] ss:$9 sm:$0xff] %v1756_v3 }
 0x127   : > { %853 = vst [vmem:[#allocation1 + $0x1] ss:$9 sm:$0xff] %v1757_v4 }
 0x128   : > { %854 = vst [vmem:[#allocation1 + $0x2] ss:$9 sm:$0xff] %v1758_v16 }
 0x129   : > { %855 = vst [vmem:[#allocation1 + $0x3] ss:$9 sm:$0xff] %v1759_v19 }
 0x12a   : > { %856 = vst [vmem:[#allocation1 + $0x4] ss:$9 sm:$0xff] %v1760_v20 }
 0x12b   : > { %857 = vst [vmem:[#allocation1 + $0x5] ss:$9 sm:$0xff] %v1761_v21 }
 0x132   : > { %v2176_v24 = vld [vmem:[#allocation1] sm:$0xff]  ;;  %v2178_v33 = vld [vmem:[#allocation1 + $0x9] sm:$0xff] }
 0x133   : > { %860 = vst [vmem:[#allocation1] ss:$9 sm:$0xff] %v1756_v3 }
 0x134   : > { %861 = vst [vmem:[#allocation1 + $0x1] ss:$9 sm:$0xff] %v1757_v4 }
 0x135   : > { %862 = vst [vmem:[#allocation1 + $0x2] ss:$9 sm:$0xff] %v1758_v16 }
 0x136   : > { %863 = vst [vmem:[#allocation1 + $0x3] ss:$9 sm:$0xff] %v1759_v19 }
 0x137   : > { %864 = vst [vmem:[#allocation1 + $0x4] ss:$9 sm:$0xff] %v1760_v20 }
 0x138   : > { %865 = vst [vmem:[#allocation1 + $0x5] ss:$9 sm:$0xff] %v1761_v21 }
 0x13f   : > { %v2180_v34 = vld [vmem:[#allocation1] sm:$0xff]  ;;  %v2182_v35 = vld [vmem:[#allocation1 + $0x9] sm:$0xff] }
 0x140   : > { %868 = vst [vmem:[#allocation1] ss:$9 sm:$0xff] %v1756_v3 }
 0x141   : > { %869 = vst [vmem:[#allocation1 + $0x1] ss:$9 sm:$0xff] %v1757_v4 }
 0x142   : > { %870 = vst [vmem:[#allocation1 + $0x2] ss:$9 sm:$0xff] %v1758_v16 }
 0x143   : > { %871 = vst [vmem:[#allocation1 + $0x3] ss:$9 sm:$0xff] %v1759_v19 }
 0x144   : > { %872 = vst [vmem:[#allocation1 + $0x4] ss:$9 sm:$0xff] %v1760_v20  ;;  %v1770_v20 = vld [vmem:[%s2060_s11 + $0x46] ss:$8 sm:$0x3] }
 0x145   : > { %873 = vst [vmem:[#allocation1 + $0x5] ss:$9 sm:$0xff] %v1761_v21 }
 0x14c   : > { %v2184_v36 = vld [vmem:[#allocation1 + $0x9] sm:$0xff]  ;;  %v2186_v37 = vld [vmem:[#allocation1] sm:$0xff] }
 0x14d   : > { %2720 = vst [vmem:[#allocation14_spill] sm:$0xff] %v2184_v36 }
 0x14e   : > { %2721 = vst [vmem:[#allocation15_spill] sm:$0xff] %v2186_v37 }
 0x14f   : > { %902 = vst [vmem:[#allocation1 + $0x10] ss:$2 sm:$0xff] %v2086_v13 }
 0x150   : > { %900 = vst [vmem:[#allocation1] ss:$2 sm:$0xff] %v2084_v12 }
 0x156   : > { %v905_v40 = vld.sshfl [vmem:[#allocation1 + $0x10] sm:$0xff pattern:$0x75316420] }
 0x157   : > { %913 = vrot.lane.b32.xlu0 %v905_v40, %s1962_s27  ;;  %v903_v50 = vld.sshfl [vmem:[#allocation1] sm:$0xff pattern:$0x75316420]  ;;  %v904_v51 = vld.sshfl [vmem:[#allocation1 + $0x8] sm:$0xff pattern:$0x75316420] }
 0x158   : > { %964 = vst [vmem:[#allocation1] ss:$9 sm:$0xff] %v1762_v38  ;;  %911 = vrot.lane.b32.xlu2 %v904_v51, %s1962_s27  ;;  %v1772_v40 = vld [vmem:[%s2060_s11 + $0x86] ss:$8 sm:$0x3] }
 0x159   : > { %966 = vst [vmem:[#allocation1 + $0x1] ss:$9 sm:$0xff] %v1763_v39 }
 0x15a   : > { %968 = vst [vmem:[#allocation1 + $0x2] ss:$9 sm:$0xff] %v1764_v41 }
 0x15b   : > { %970 = vst [vmem:[#allocation1 + $0x3] ss:$9 sm:$0xff] %v1765_v52 }
 0x15c   : > { %972 = vst [vmem:[#allocation1 + $0x4] ss:$9 sm:$0xff] %v1766_v53 }
 0x15d   : > { %974 = vst [vmem:[#allocation1 + $0x5] ss:$9 sm:$0xff] %v1767_v54 }
 0x160   : > { %909 = vrot.lane.b32.xlu2 %v903_v50, %s1962_s27 }
 0x164   : > { %v2196_v55 = vld [vmem:[#allocation1] sm:$0xff]  ;;  %v2198_v56 = vld [vmem:[#allocation1 + $0x9] sm:$0xff] }
 0x165   : > { %2722 = vst [vmem:[#allocation16_spill] sm:$0xff] %v2196_v55 }
 0x166   : > { %2723 = vst [vmem:[#allocation17_spill] sm:$0xff] %v2198_v56 }
 0x167   : > { %977 = vst [vmem:[#allocation1] ss:$9 sm:$0xff] %v1762_v38 }
 0x168   : > { %978 = vst [vmem:[#allocation1 + $0x1] ss:$9 sm:$0xff] %v1763_v39 }
 0x169   : > { %979 = vst [vmem:[#allocation1 + $0x2] ss:$9 sm:$0xff] %v1764_v41 }
 0x16a   : > { %980 = vst [vmem:[#allocation1 + $0x3] ss:$9 sm:$0xff] %v1765_v52 }
 0x16b   : > { %981 = vst [vmem:[#allocation1 + $0x4] ss:$9 sm:$0xff] %v1766_v53 }
 0x16c   : > { %982 = vst [vmem:[#allocation1 + $0x5] ss:$9 sm:$0xff] %v1767_v54 }
 0x173   : > { %v2200_v57 = vld [vmem:[#allocation1] sm:$0xff]  ;;  %v2202_v58 = vld [vmem:[#allocation1 + $0x9] sm:$0xff] }
 0x174   : > { %2724 = vst [vmem:[#allocation18_spill] sm:$0xff] %v2200_v57 }
 0x175   : > { %2725 = vst [vmem:[#allocation19_spill] sm:$0xff] %v2202_v58 }
 0x176   : > { %985 = vst [vmem:[#allocation1] ss:$9 sm:$0xff] %v1762_v38 }
 0x177   : > { %986 = vst [vmem:[#allocation1 + $0x1] ss:$9 sm:$0xff] %v1763_v39 }
 0x178   : > { %987 = vst [vmem:[#allocation1 + $0x2] ss:$9 sm:$0xff] %v1764_v41 }
 0x179   : > { %988 = vst [vmem:[#allocation1 + $0x3] ss:$9 sm:$0xff] %v1765_v52 }
 0x17a   : > { %989 = vst [vmem:[#allocation1 + $0x4] ss:$9 sm:$0xff] %v1766_v53 }
 0x17b   : > { %990 = vst [vmem:[#allocation1 + $0x5] ss:$9 sm:$0xff] %v1767_v54 }
 0x182   : > { %v2204_v3 = vld [vmem:[#allocation1] sm:$0xff]  ;;  %v2206_v4 = vld [vmem:[#allocation1 + $0x9] sm:$0xff] }
 0x183   : > { %2726 = vst [vmem:[#allocation20_spill] sm:$0xff] %v2204_v3 }
 0x184   : > { %2727 = vst [vmem:[#allocation21_spill] sm:$0xff] %v2206_v4  ;;  %v1775_v4 = vld [vmem:[%s2060_s11 + $0x27] ss:$8 sm:$0x3] }
 0x185   : > { %993 = vst [vmem:[#allocation1] ss:$9 sm:$0xff] %v1762_v38 }
 0x186   : > { %994 = vst [vmem:[#allocation1 + $0x1] ss:$9 sm:$0xff] %v1763_v39  ;;  %v1771_v39 = vld [vmem:[%s2060_s11 + $0x66] ss:$8 sm:$0x3] }
 0x187   : > { %995 = vst [vmem:[#allocation1 + $0x2] ss:$9 sm:$0xff] %v1764_v41  ;;  %v1773_v41 = vld [vmem:[%s2060_s11 + $0xa6] ss:$8 sm:$0x3] }
 0x188   : > { %996 = vst [vmem:[#allocation1 + $0x3] ss:$9 sm:$0xff] %v1765_v52 }
 0x189   : > { %997 = vst [vmem:[#allocation1 + $0x4] ss:$9 sm:$0xff] %v1766_v53 }
 0x18a   : > { %998 = vst [vmem:[#allocation1 + $0x5] ss:$9 sm:$0xff] %v1767_v54 }
 0x191   : > { %v2208_v5 = vld [vmem:[#allocation1 + $0x9] sm:$0xff]  ;;  %v2210_v16 = vld [vmem:[#allocation1] sm:$0xff] }
 0x192   : > { %2728 = vst [vmem:[#allocation22_spill] sm:$0xff] %v2208_v5 }
 0x193   : > { %2729 = vst [vmem:[#allocation23_spill] sm:$0xff] %v2210_v16 }
 0x194   : > { %1027 = vst [vmem:[#allocation1 + $0x10] ss:$2 sm:$0xff] %v2086_v13 }
 0x195   : > { %1025 = vst [vmem:[#allocation1] ss:$2 sm:$0xff] %v2084_v12 }
 0x19b   : > { %v1030_v19 = vld.sshfl [vmem:[#allocation1 + $0x10] sm:$0xff pattern:$0x75316420] }
 0x19c   : > { %1038 = vrot.lane.b32.xlu1 %v1030_v19, %s1963_s29  ;;  %v1029_v21 = vld.sshfl [vmem:[#allocation1 + $0x8] sm:$0xff pattern:$0x75316420]  ;;  %v1028_v38 = vld.sshfl [vmem:[#allocation1] sm:$0xff pattern:$0x75316420] }
 0x19d   : > { %1036 = vrot.lane.b32.xlu0 %v1029_v21, %s1963_s29  ;;  %1089 = vst [vmem:[#allocation1] ss:$9 sm:$0xff] %v1768_v17  ;;  %1034 = vrot.lane.b32.xlu2 %v1028_v38, %s1963_s29  ;;  %s1898_s29 = scalar_lea.hbm %s2705_s5, 32 }
 0x19e   : > { %1091 = vst [vmem:[#allocation1 + $0x1] ss:$9 sm:$0xff] %v1769_v18 }
 0x19f   : > { %1093 = vst [vmem:[#allocation1 + $0x2] ss:$9 sm:$0xff] %v1770_v20 }
 0x1a0   : > { %1095 = vst [vmem:[#allocation1 + $0x3] ss:$9 sm:$0xff] %v1771_v39 }
 0x1a1   : > { %1097 = vst [vmem:[#allocation1 + $0x4] ss:$9 sm:$0xff] %v1772_v40 }
 0x1a2   : > { %1099 = vst [vmem:[#allocation1 + $0x5] ss:$9 sm:$0xff] %v1773_v41 }
 0x1a9   : > { %v2220_v50 = vld [vmem:[#allocation1] sm:$0xff]  ;;  %v2222_v51 = vld [vmem:[#allocation1 + $0x9] sm:$0xff] }
 0x1aa   : > { %2730 = vst [vmem:[#allocation24_spill] sm:$0xff] %v2220_v50 }
 0x1ab   : > { %2731 = vst [vmem:[#allocation25_spill] sm:$0xff] %v2222_v51 }
 0x1ac   : > { %1102 = vst [vmem:[#allocation1] ss:$9 sm:$0xff] %v1768_v17 }
 0x1ad   : > { %1103 = vst [vmem:[#allocation1 + $0x1] ss:$9 sm:$0xff] %v1769_v18 }
 0x1ae   : > { %1104 = vst [vmem:[#allocation1 + $0x2] ss:$9 sm:$0xff] %v1770_v20 }
 0x1af   : > { %1105 = vst [vmem:[#allocation1 + $0x3] ss:$9 sm:$0xff] %v1771_v39 }
 0x1b0   : > { %1106 = vst [vmem:[#allocation1 + $0x4] ss:$9 sm:$0xff] %v1772_v40 }
 0x1b1   : > { %1107 = vst [vmem:[#allocation1 + $0x5] ss:$9 sm:$0xff] %v1773_v41 }
 0x1b8   : > { %v2224_v52 = vld [vmem:[#allocation1] sm:$0xff]  ;;  %v2226_v53 = vld [vmem:[#allocation1 + $0x9] sm:$0xff] }
 0x1b9   : > { %2732 = vst [vmem:[#allocation26_spill] sm:$0xff] %v2224_v52 }
 0x1ba   : > { %2733 = vst [vmem:[#allocation27_spill] sm:$0xff] %v2226_v53 }
 0x1bb   : > { %1110 = vst [vmem:[#allocation1] ss:$9 sm:$0xff] %v1768_v17 }
 0x1bc   : > { %1111 = vst [vmem:[#allocation1 + $0x1] ss:$9 sm:$0xff] %v1769_v18 }
 0x1bd   : > { %1112 = vst [vmem:[#allocation1 + $0x2] ss:$9 sm:$0xff] %v1770_v20 }
 0x1be   : > { %1113 = vst [vmem:[#allocation1 + $0x3] ss:$9 sm:$0xff] %v1771_v39 }
 0x1bf   : > { %1114 = vst [vmem:[#allocation1 + $0x4] ss:$9 sm:$0xff] %v1772_v40 }
 0x1c0   : > { %1115 = vst [vmem:[#allocation1 + $0x5] ss:$9 sm:$0xff] %v1773_v41 }
 0x1c7   : > { %v2228_v54 = vld [vmem:[#allocation1] sm:$0xff]  ;;  %v2230_v19 = vld [vmem:[#allocation1 + $0x9] sm:$0xff] }
 0x1c8   : > { %2734 = vst [vmem:[#allocation28_spill] sm:$0xff] %v2228_v54  ;;  %v1774_v54 = vld [vmem:[%s2060_s11 + $0x7] ss:$8 sm:$0x3] }
 0x1c9   : > { %2735 = vst [vmem:[#allocation29_spill] sm:$0xff] %v2230_v19 }
 0x1ca   : > { %1118 = vst [vmem:[#allocation1] ss:$9 sm:$0xff] %v1768_v17  ;;  %v1776_v17 = vld [vmem:[%s2060_s11 + $0x47] ss:$8 sm:$0x3] }
 0x1cb   : > { %1119 = vst [vmem:[#allocation1 + $0x1] ss:$9 sm:$0xff] %v1769_v18 }
 0x1cc   : > { %1120 = vst [vmem:[#allocation1 + $0x2] ss:$9 sm:$0xff] %v1770_v20 }
 0x1cd   : > { %1121 = vst [vmem:[#allocation1 + $0x3] ss:$9 sm:$0xff] %v1771_v39  ;;  %v1777_v39 = vld [vmem:[%s2060_s11 + $0x67] ss:$8 sm:$0x3] }
 0x1ce   : > { %1122 = vst [vmem:[#allocation1 + $0x4] ss:$9 sm:$0xff] %v1772_v40  ;;  %v1778_v40 = vld [vmem:[%s2060_s11 + $0x87] ss:$8 sm:$0x3] }
 0x1cf   : > { %1123 = vst [vmem:[#allocation1 + $0x5] ss:$9 sm:$0xff] %v1773_v41  ;;  %v1779_v41 = vld [vmem:[%s2060_s11 + $0xa7] ss:$8 sm:$0x3] }
 0x1d6   : > { %v2232_v21 = vld [vmem:[#allocation1 + $0x9] sm:$0xff]  ;;  %v2234_v38 = vld [vmem:[#allocation1] sm:$0xff] }
 0x1d7   : > { %2736 = vst [vmem:[#allocation30_spill] sm:$0xff] %v2232_v21 }
 0x1d8   : > { %2737 = vst [vmem:[#allocation31_spill] sm:$0xff] %v2234_v38 }
 0x1d9   : > { %1152 = vst [vmem:[#allocation1 + $0x10] ss:$2 sm:$0xff] %v2086_v13 }
 0x1da   : > { %1150 = vst [vmem:[#allocation1] ss:$2 sm:$0xff] %v2084_v12 }
 0x1e0   : > { %v1155_v19 = vld.sshfl [vmem:[#allocation1 + $0x10] sm:$0xff pattern:$0x75316420] }
 0x1e1   : > { %1163 = vrot.lane.b32.xlu1 %v1155_v19, %s1964_s7  ;;  %v1154_v18 = vld.sshfl [vmem:[#allocation1 + $0x8] sm:$0xff pattern:$0x75316420]  ;;  %v1153_v20 = vld.sshfl [vmem:[#allocation1] sm:$0xff pattern:$0x75316420] }
 0x1e2   : > { %1161 = vrot.lane.b32.xlu0 %v1154_v18, %s1964_s7  ;;  %1212 = vst [vmem:[#allocation1] ss:$9 sm:$0xff] %v1774_v54 }
 0x1e3   : > { %1214 = vst [vmem:[#allocation1 + $0x1] ss:$9 sm:$0xff] %v1775_v4 }
 0x1e4   : > { %1216 = vst [vmem:[#allocation1 + $0x2] ss:$9 sm:$0xff] %v1776_v17 }
 0x1e5   : > { %1218 = vst [vmem:[#allocation1 + $0x3] ss:$9 sm:$0xff] %v1777_v39 }
 0x1e6   : > { %1220 = vst [vmem:[#allocation1 + $0x4] ss:$9 sm:$0xff] %v1778_v40 }
 0x1e7   : > { %1222 = vst [vmem:[#allocation1 + $0x5] ss:$9 sm:$0xff] %v1779_v41 }
 0x1e9   : > { %1159 = vrot.lane.b32.xlu1 %v1153_v20, %s1964_s7 }
 0x1ee   : > { %v2244_v21 = vld [vmem:[#allocation1] sm:$0xff]  ;;  %v2246_v38 = vld [vmem:[#allocation1 + $0x9] sm:$0xff] }
 0x1ef   : > { %2738 = vst [vmem:[#allocation32_spill] sm:$0xff] %v2244_v21 }
 0x1f0   : > { %2739 = vst [vmem:[#allocation33_spill] sm:$0xff] %v2246_v38 }
 0x1f1   : > { %1225 = vst [vmem:[#allocation1] ss:$9 sm:$0xff] %v1774_v54 }
 0x1f2   : > { %1226 = vst [vmem:[#allocation1 + $0x1] ss:$9 sm:$0xff] %v1775_v4 }
 0x1f3   : > { %1227 = vst [vmem:[#allocation1 + $0x2] ss:$9 sm:$0xff] %v1776_v17 }
 0x1f4   : > { %1228 = vst [vmem:[#allocation1 + $0x3] ss:$9 sm:$0xff] %v1777_v39 }
 0x1f5   : > { %1229 = vst [vmem:[#allocation1 + $0x4] ss:$9 sm:$0xff] %v1778_v40 }
 0x1f6   : > { %1230 = vst [vmem:[#allocation1 + $0x5] ss:$9 sm:$0xff] %v1779_v41 }
 0x1fd   : > { %v2248_v19 = vld [vmem:[#allocation1] sm:$0xff]  ;;  %v2250_v18 = vld [vmem:[#allocation1 + $0x9] sm:$0xff] }
 0x1fe   : > { %2740 = vst [vmem:[#allocation34_spill] sm:$0xff] %v2248_v19 }
 0x1ff   : > { %2741 = vst [vmem:[#allocation35_spill] sm:$0xff] %v2250_v18 }
 0x200   : > { %1233 = vst [vmem:[#allocation1] ss:$9 sm:$0xff] %v1774_v54 }
 0x201   : > { %1234 = vst [vmem:[#allocation1 + $0x1] ss:$9 sm:$0xff] %v1775_v4 }
 0x202   : > { %1235 = vst [vmem:[#allocation1 + $0x2] ss:$9 sm:$0xff] %v1776_v17 }
 0x203   : > { %1236 = vst [vmem:[#allocation1 + $0x3] ss:$9 sm:$0xff] %v1777_v39 }
 0x204   : > { %1237 = vst [vmem:[#allocation1 + $0x4] ss:$9 sm:$0xff] %v1778_v40 }
 0x205   : > { %1238 = vst [vmem:[#allocation1 + $0x5] ss:$9 sm:$0xff] %v1779_v41 }
 0x20c   : > { %v2252_v20 = vld [vmem:[#allocation1] sm:$0xff]  ;;  %v2254_v21 = vld [vmem:[#allocation1 + $0x9] sm:$0xff] }
 0x20d   : > { %2742 = vst [vmem:[#allocation36_spill] sm:$0xff] %v2252_v20 }
 0x20e   : > { %2743 = vst [vmem:[#allocation37_spill] sm:$0xff] %v2254_v21 }
 0x20f   : > { %1241 = vst [vmem:[#allocation1] ss:$9 sm:$0xff] %v1774_v54  ;;  %v532_v54 = vpop.permute.xlu1 %531 }
 0x210   : > { %1242 = vst [vmem:[#allocation1 + $0x1] ss:$9 sm:$0xff] %v1775_v4  ;;  %v407_v4 = vpop.permute.xlu0 %406 }
 0x211   : > { %1243 = vst [vmem:[#allocation1 + $0x2] ss:$9 sm:$0xff] %v1776_v17  ;;  %v405_v17 = vpop.permute.xlu2 %404 }
 0x212   : > { %1244 = vst [vmem:[#allocation1 + $0x3] ss:$9 sm:$0xff] %v1777_v39  ;;  %v410_v39 = vlaneseq }
 0x213   : > { %1245 = vst [vmem:[#allocation1 + $0x4] ss:$9 sm:$0xff] %v1778_v40 }
 0x214   : > { %1246 = vst [vmem:[#allocation1 + $0x5] ss:$9 sm:$0xff] %v1779_v41 }
 0x217   : > { %v534_v41 = vpop.permute.xlu1 %533 }
 0x218   : > { %v409_v40 = vpop.permute.xlu0 %408 }
 0x21b   : > { %v2256_v38 = vld [vmem:[#allocation1 + $0x9] sm:$0xff]  ;;  %v2258_v19 = vld [vmem:[#allocation1] sm:$0xff] }
 0x21c   : > { %2744 = vst [vmem:[#allocation38_spill] sm:$0xff] %v2256_v38  ;;  %v2262_v38 = vand.u32 127, %v410_v39 }
 0x21d   : > { %2745 = vst [vmem:[#allocation39_spill] sm:$0xff] %v2258_v19  ;;  %v530_v19 = vpop.permute.xlu2 %529 }
 0x21e   : > { %1275 = vst [vmem:[#allocation1 + $0x10] ss:$2 sm:$0xff] %v2086_v13  ;;  %vm412_vm0 = vcmp.lt.s32.totalorder %v2262_v38, 127  ;;  %v1743_v13 = vld [vmem:[%s2702_s2 + $0x4] sm:$0x3]  ;;  %vm535_vm1 = vcmp.lt.s32.totalorder %v2262_v38, 126 }
 0x21f   : > { %1273 = vst [vmem:[#allocation1] ss:$2 sm:$0xff] %v2084_v12  ;;  %v536_v39 = vsel %vm535_vm1, %v532_v54, %v534_v41  ;;  %v666_v5 = vpop.permute.xlu1 %665  ;;  %v2276_v58 = vperm.slane %v1743_v13, 0  ;;  %v414_v52 = vsel %vm412_vm0, %v405_v17, %v407_v4  ;;  %vm667_vm5 = vcmp.lt.s32.totalorder %v2262_v38, 112 }
 0x220   : > { %v664_v53 = vpop.permute.xlu0 %663  ;;  %vm792_vm8 = vcmp.lt.s32.totalorder %v2262_v38, 111  ;;  %vm915_vm9 = vcmp.lt.s32.totalorder %v2262_v38, 110  ;;  %vm1040_vm10 = vcmp.lt.s32.totalorder %v2262_v38, 96  ;;  %vm1165_vm11 = vcmp.lt.s32.totalorder %v2262_v38, 95 }
 0x221   : > { %2746 = vst [vmem:[#allocation40_spill] sm:$0xff] %v2276_v58  ;;  %vm1288_vm12 = vcmp.lt.s32.totalorder %v2262_v38, 94 }
 0x225   : > { %v1278_v18 = vld.sshfl [vmem:[#allocation1 + $0x10] sm:$0xff pattern:$0x75316420]  ;;  %v662_v56 = vpop.permute.xlu2 %661 }
 0x226   : > { %1286 = vrot.lane.b32.xlu0 %v1278_v18, %s1965_s8  ;;  %v1277_v20 = vld.sshfl [vmem:[#allocation1 + $0x8] sm:$0xff pattern:$0x75316420]  ;;  %v1276_v21 = vld.sshfl [vmem:[#allocation1] sm:$0xff pattern:$0x75316420] }
 0x227   : > { %1284 = vrot.lane.b32.xlu2 %v1277_v20, %s1965_s8  ;;  %v283_v18 = vld [vmem:[%s2702_s2] sm:$0x3]  ;;  %v2272_v20 = vperm.slane %v1743_v13, 1  ;;  %v791_v10 = vpop.permute.xlu1 %790 }
 0x228   : > { %v2274_v3 = vperm.slane %v283_v18, 1  ;;  %v2280_v57 = vperm.slane %v283_v18, 0  ;;  %v668_v18 = vsel %vm667_vm5, %v664_v53, %v666_v5  ;;  %v789_v62 = vpop.permute.xlu0 %788 }
 0x229   : > { %v546_v51 = vmul.f32 %v2272_v20, %v536_v39 }
 0x22a   : > { %v289_v50 = vrot.slane %v2274_v3, 4  ;;  %2747 = vst [vmem:[#allocation41_spill] sm:$0xff] %v2280_v57 }
 0x22f   : > { %1282 = vrot.lane.b32.xlu2 %v1276_v21, %s1965_s8  ;;  %v413_v21 = vsel %vm412_vm0, %v407_v4, %v409_v40  ;;  %v537_v40 = vsel %vm535_vm1, %v530_v19, %v532_v54  ;;  %v291_v4 = vsel %vm290_vm3, %v2280_v57, %v289_v50  ;;  %v671_v50 = vmul.f32 %v668_v18, %v2274_v3  ;;  %s260_s8 = sand.u32 1, %s1940_s19  }
 0x230   : > { %v429_v16 = vrot.slane %v413_v21, 7  ;;  %v561_v21 = vrot.slane %v546_v51, 7  ;;  %v545_v13 = vmul.f32 %v2276_v58, %v537_v40  ;;  %v2292_v11 = vmul.f32 %v291_v4, %v2084_v12  ;;  %v2301_v12 = vpop.permute.xlu2 %911  ;;  %s1729_s9 = sshll.u32 %s260_s8, 4  ;;  %s1618_s21 = scalar_lea.sflag [#allocation3], %s260_s8 }
 0x231   : > { %v686_v36 = vrot.slane %v671_v50, 7  ;;  %s262_s14 = scalar_lea.vmem [#allocation2], %s1729_s9 }
 0x232   : > { %v431_v41 = vsel %vm309_vm2, %v414_v52, %v429_v16  ;;  %v433_v17 = vsel %vm312_vm4, %v414_v52, %v429_v16  ;;  %v435_v19 = vsel %vm315_vm6, %v414_v52, %v429_v16  ;;  %v430_v54 = vsel %vm307_vm7, %v414_v52, %v429_v16  ;;  %s1633_s15 = sshll.u32 %s262_s14, 4  ;;  %s1634_s15 = int_to_ptr.vmem [resolvable:$true] %s1633_s15 }
 0x233   : > { %v432_v39 = vrot.slane %v431_v41, 1  ;;  %v434_v51 = vrot.slane %v433_v17, 2  ;;  %v563_v40 = vsel %vm309_vm2, %v545_v13, %v561_v21  ;;  %v436_v55 = vrot.slane %v435_v19, 3 }
 0x234   : > { %v565_v15 = vsel %vm312_vm4, %v545_v13, %v561_v21  ;;  %v567_v5 = vsel %vm315_vm6, %v545_v13, %v561_v21  ;;  %v669_v41 = vsel %vm667_vm5, %v662_v56, %v664_v53  ;;  %v437_v14 = vperm.slane %v430_v54, 0 }
 0x235   : > { %v438_v16 = vperm.slane %v430_v54, 1  ;;  %v439_v52 = vperm.slane %v432_v39, 0  ;;  %v440_v4 = vperm.slane %v432_v39, 1  ;;  %v562_v17 = vsel %vm307_vm7, %v545_v13, %v561_v21 }
 0x236   : > { %v564_v18 = vrot.slane %v563_v40, 1  ;;  %v2305_v19 = vrot.slane %v2292_v11, 3  ;;  %v566_v61 = vrot.slane %v565_v15, 2  ;;  %v568_v60 = vrot.slane %v567_v5, 3 }
 0x237   : > { %v670_v56 = vmul.f32 %v669_v41, %v2280_v57  ;;  %v441_v53 = vperm.slane %v434_v51, 0  ;;  %v442_v54 = vperm.slane %v434_v51, 1  ;;  %v443_v9 = vperm.slane %v436_v55, 0  ;;  %v2319_v40 = vld [vmem:[%s2060_s11 + $0x10] ss:$8 sm:$0x3]  ;;  %v914_v57 = vpop.permute.xlu0 %913 }
 0x238   : > { %v444_v59 = vperm.slane %v436_v55, 1  ;;  %v2309_v39 = vmul.f32 %v2100_v25, %v437_v14  ;;  %v2312_v21 = vmul.f32 %v2102_v26, %v438_v16  ;;  %v2315_v13 = vmul.f32 %v2104_v27, %v439_v52  ;;  %v2324_v14 = vld [vmem:[%s2060_s11 + $0x30] ss:$8 sm:$0x3]  ;;  %1337 = vst [vmem:[#allocation1] ss:$9 sm:$0xff] %v2319_v40 }
 0x239   : > { %v569_v15 = vperm.slane %v562_v17, 0  ;;  %v570_v50 = vperm.slane %v562_v17, 1  ;;  %v571_v51 = vperm.slane %v564_v18, 0  ;;  %v572_v5 = vperm.slane %v564_v18, 1  ;;  %1339 = vst [vmem:[#allocation1 + $0x1] ss:$9 sm:$0xff] %v2324_v14 }
 0x23a   : > { %2748 = vst [vmem:[#allocation42_spill] sm:$0xff] %v2312_v21  ;;  %v793_v55 = vsel %vm792_vm8, %v789_v62, %v791_v10  ;;  %v573_v25 = vperm.slane %v566_v61, 0  ;;  %v574_v26 = vperm.slane %v566_v61, 1  ;;  %v575_v41 = vperm.slane %v568_v60, 0  ;;  %v787_v10 = vpop.permute.xlu1 %786 }
 0x23b   : > { %2749 = vst [vmem:[#allocation43_spill] sm:$0xff] %v2315_v13  ;;  %v690_v27 = vsel %vm312_vm4, %v670_v56, %v686_v36  ;;  %v2328_v16 = vld [vmem:[%s2060_s11 + $0x50] ss:$8 sm:$0x3]  ;;  %v2331_v52 = vmul.f32 %v2106_v28, %v440_v4  ;;  %v2334_v17 = vmul.f32 %v2108_v29, %v441_v53  ;;  %v576_v18 = vperm.slane %v568_v60, 1 }
 0x23c   : > { %v692_v13 = vsel %vm315_vm6, %v670_v56, %v686_v36  ;;  %v2338_v21 = vld [vmem:[%s2060_s11 + $0x70] ss:$8 sm:$0x3]  ;;  %v2342_v61 = vmul.f32 %v2110_v30, %v442_v54  ;;  %v2345_v37 = vmul.f32 %v2112_v31, %v443_v9  ;;  %v2348_v28 = vmul.f32 %v2114_v32, %v444_v59  ;;  %1341 = vst [vmem:[#allocation1 + $0x2] ss:$9 sm:$0xff] %v2328_v16 }
 0x23d   : > { %2750 = vst [vmem:[#allocation44_spill] sm:$0xff] %v2334_v17  ;;  %v809_v29 = vrot.slane %v793_v55, 7  ;;  %v2351_v60 = vld [vmem:[%s2060_s11 + $0x90] ss:$8 sm:$0x3]  ;;  %v2355_v4 = vsel %vm307_vm7, %v670_v56, %v686_v36  ;;  %v688_v53 = vsel %vm309_vm2, %v670_v56, %v686_v36  ;;  %v691_v17 = vrot.slane %v690_v27, 2  ;;  %v910_v56 = vpop.permute.xlu2 %909 }
 0x23e   : > { %v794_v30 = vsel %vm792_vm8, %v787_v10, %v789_v62  ;;  %v2362_v9 = vld [vmem:[%s2060_s11 + $0xb0] ss:$8 sm:$0x3]  ;;  %v2366_v31 = vmul.f32 %v2124_v42, %v569_v15  ;;  %v2369_v32 = vmul.f32 %v2126_v43, %v570_v50  ;;  %v2372_v59 = vmul.f32 %v2128_v44, %v571_v51  ;;  %1343 = vst [vmem:[#allocation1 + $0x3] ss:$9 sm:$0xff] %v2338_v21  ;;  %s1631_s11 = scalar_lea.hbm %s2705_s5, %s1810_s10 }
 0x23f   : > { %v693_v36 = vrot.slane %v692_v13, 3  ;;  %v2376_v62 = vmul.f32 %v2130_v45, %v572_v5  ;;  %v2379_v54 = vmul.f32 %v2132_v46, %v573_v25  ;;  %v2382_v55 = vmul.f32 %v2134_v47, %v574_v26  ;;  %1345 = vst [vmem:[#allocation1 + $0x4] ss:$9 sm:$0xff] %v2351_v60  ;;  %s1635_s16 = sshll.u32 %s1631_s11, 4  ;;  %s1636_s16 = int_to_ptr.hbm [resolvable:$true] %s1635_s16 }
 0x240   : > { %v2385_v42 = vmul.f32 %v2138_v49, %v575_v41  ;;  %v2389_v43 = vmul.f32 %v2136_v48, %v576_v18  ;;  %v689_v44 = vrot.slane %v688_v53, 1  ;;  %v811_v45 = vsel %vm309_vm2, %v794_v30, %v809_v29  ;;  %1347 = vst [vmem:[#allocation1 + $0x5] ss:$9 sm:$0xff] %v2362_v9  ;;  %s1892_s17 = sshra.s32 %s1636_s16, 4  ;;  %s1893_s17 = int_to_ptr.hbm [resolvable:$true] %s1892_s17 }
 0x241   : > { %2751 = vst [vmem:[#allocation45_spill] sm:$0xff] %v2379_v54  ;;  %v698_v46 = vperm.slane %v691_v17, 0  ;;  %v699_v15 = vperm.slane %v691_v17, 1  ;;  %v308_v47 = vsel %vm307_vm7, %v2292_v11, %v2305_v19  ;;  %v310_v49 = vsel %vm309_vm2, %v2292_v11, %v2305_v19  ;;  %s1894_s24 = scalar_lea.hbm %s1893_s17, 16  ;;  %p1899_p1 = scmp.lt.s32.totalorder %s1893_s17, %s2705_s5 }
 0x242   : > { %2752 = vst [vmem:[#allocation46_spill] sm:$0xff] %v2382_v55  ;;  %v700_v50 = vperm.slane %v693_v36, 0  ;;  %v813_v51 = vsel %vm312_vm4, %v794_v30, %v809_v29  ;;  %v815_v5 = vsel %vm315_vm6, %v794_v30, %v809_v29  ;;  %v701_v25 = vperm.slane %v693_v36, 1  ;;  %p1895_p12 = scmp.ne.s32.totalorder %s1893_s17, %s1894_s24  ;;  %p1900_p2 = scmp.lt.s32.totalorder %s1898_s29, %s1894_s24 }
 0x243   : > { %2753 = vst [vmem:[#allocation47_spill] sm:$0xff] %v2389_v43  ;;  %v810_v26 = vsel %vm307_vm7, %v794_v30, %v809_v29  ;;  %v812_v41 = vrot.slane %v811_v45, 1  ;;  %v916_v27 = vsel %vm915_vm9, %v2301_v12, %v914_v57  ;;  %v2407_v17 = vperm.slane %v689_v44, 0  ;;  %v1039_v29 = vpop.permute.xlu1 %1038  ;;  %v1037_v30 = vpop.permute.xlu0 %1036 }
 0x244   : > { %v2409_v18 = vperm.slane %v689_v44, 1  ;;  %v318_v10 = vperm.slane %v308_v47, 0  ;;  %v311_v53 = vrot.slane %v310_v49, 1  ;;  %v2412_v48 = vmul.f32 %v2156_v63, %v698_v46  ;;  %p1896_p13 = pnand %p1895_p12, %p2037_p4  ;;  %p1901_p3 = por %p1900_p2, %p1899_p1 }
 0x245   : > { %v2415_v13 = vmul.f32 %v2158_v0, %v699_v15  ;;  %v814_v36 = vrot.slane %v813_v51, 2  ;;  %v816_v55 = vrot.slane %v815_v5, 3  ;;  %v2418_v45 = vmul.f32 %v2162_v2, %v700_v50  ;;  %v1035_v50 = vpop.permute.xlu2 %1034 }
 0x246   : > { %v817_v57 = vperm.slane %v810_v26, 0  ;;  %v919_v54 = vmul.f32 %v916_v27, %v2272_v20  ;;  %v319_v44 = vperm.slane %v308_v47, 1  ;;  %v2422_v43 = vmul.f32 %v2160_v1, %v701_v25  ;;  %p1897_p0 = pneg %p1896_p13 }
 0x247   : > { %v818_v49 = vperm.slane %v810_v26, 1  ;;  %v819_v63 = vperm.slane %v812_v41, 0  ;;  %v917_v0 = vsel %vm915_vm9, %v910_v56, %v2301_v12  ;;  %v2427_v46 = vld [vmem:[#allocation1] sm:$0xff]  ;;  %v2429_v15 = vld [vmem:[#allocation1 + $0x9] sm:$0xff]  ;;  %v820_v51 = vperm.slane %v812_v41, 1 }
 0x248   : > { %2754 = vst [vmem:[#allocation48_spill] sm:$0xff] %v2427_v46  ;;  %v1041_v2 = vsel %vm1040_vm10, %v1037_v30, %v1039_v29  ;;  %v385_v47 = vmul.f32 %v2068_v6, %v318_v10  ;;  %v320_v1 = vperm.slane %v311_v53, 0  ;;  %v821_v5 = vperm.slane %v814_v36, 0  ;;  %p1902_p5 = pnand %p1901_p3, %p1897_p0 }
 0x249   : > { %2755 = vst [vmem:[#allocation49_spill] sm:$0xff] %v2429_v15  ;;  %v822_v25 = vperm.slane %v814_v36, 1  ;;  %v823_v26 = vperm.slane %v816_v55, 0  ;;  %v824_v27 = vperm.slane %v816_v55, 1  ;;  %v2437_v12 = vmul.f32 %v2172_v22, %v817_v57  ;;  %v2756_v57 = vld [vmem:[#allocation15_spill] sm:$0xff] }
 0x24a   : > { %1350 = vst [vmem:[#allocation1] ss:$9 sm:$0xff] %v2319_v40  ;;  %v934_v56 = vrot.slane %v919_v54, 7  ;;  %v918_v41 = vmul.f32 %v917_v0, %v2276_v58  ;;  %v386_v29 = vmul.f32 %v2070_v7, %v319_v44  ;;  %v2443_v6 = vmul.f32 %v2174_v23, %v818_v49  ;;  %v2757_v44 = vld [vmem:[#allocation42_spill] sm:$0xff] }
 0x24b   : > { %1351 = vst [vmem:[#allocation1 + $0x1] ss:$9 sm:$0xff] %v2324_v14  ;;  %v2446_v10 = vmul.f32 %v2176_v24, %v819_v63  ;;  %v1044_v55 = vmul.f32 %v1041_v2, %v2274_v3  ;;  %v1042_v36 = vsel %vm1040_vm10, %v1035_v50, %v1037_v30  ;;  %v512_v22 = vadd.f32 %v2309_v39, %v385_v47  ;;  %v2758_v63 = vld [vmem:[#allocation41_spill] sm:$0xff]  ;;  %v2760_v47 = vld [vmem:[#allocation10_spill] sm:$0xff] }
 0x24c   : > { %1352 = vst [vmem:[#allocation1 + $0x2] ss:$9 sm:$0xff] %v2328_v16  ;;  %v387_v7 = vmul.f32 %v2072_v8, %v320_v1  ;;  %v321_v54 = vperm.slane %v311_v53, 1  ;;  %v316_v23 = vsel %vm315_vm6, %v2292_v11, %v2305_v19  ;;  %v2459_v24 = vmul.f32 %v2178_v33, %v820_v51 }
 0x24d   : > { %1353 = vst [vmem:[#allocation1 + $0x3] ss:$9 sm:$0xff] %v2338_v21  ;;  %v2462_v3 = vmul.f32 %v2180_v34, %v821_v5  ;;  %v2465_v30 = vmul.f32 %v2182_v35, %v822_v25  ;;  %v2468_v39 = vmul.f32 %v2756_v57, %v823_v26  ;;  %v2472_v8 = vsel %vm309_vm2, %v918_v41, %v934_v56  ;;  %v2761_v5 = vld [vmem:[#allocation43_spill] sm:$0xff]  ;;  %v2762_v26 = vld [vmem:[#allocation5_spill] sm:$0xff]  ;;  %v2763_v57 = vld [vmem:[#allocation14_spill] sm:$0xff] }
 0x24e   : > { %1354 = vst [vmem:[#allocation1 + $0x4] ss:$9 sm:$0xff] %v2351_v60  ;;  %v938_v53 = vsel %vm312_vm4, %v918_v41, %v934_v56  ;;  %v513_v49 = vadd.f32 %v2757_v44, %v386_v29  ;;  %v313_v33 = vsel %vm312_vm4, %v2292_v11, %v2305_v19  ;;  %v2480_v34 = vsel %vm315_vm6, %v918_v41, %v934_v56 }
 0x24f   : > { %1355 = vst [vmem:[#allocation1 + $0x5] ss:$9 sm:$0xff] %v2362_v9  ;;  %v1059_v35 = vrot.slane %v1044_v55, 7  ;;  %v1043_v0 = vmul.f32 %v1042_v36, %v2758_v63  ;;  %v317_v51 = vrot.slane %v316_v23, 3  ;;  %v644_v2 = vadd.f32 %v2366_v31, %v512_v22  ;;  %v2765_v63 = vld [vmem:[#allocation11_spill] sm:$0xff] }
 0x250   : > { %v2759_v50 = vperm.slane %v2355_v4, 0  ;;  %v514_v25 = vadd.f32 %v2761_v5, %v387_v7  ;;  %v388_v29 = vmul.f32 %v2762_v26, %v321_v54  ;;  %v2490_v44 = vmul.f32 %v2763_v57, %v824_v27 }
 0x251   : > { %v935_v11 = vsel %vm307_vm7, %v918_v41, %v934_v56  ;;  %v939_v19 = vrot.slane %v938_v53, 2  ;;  %v314_v55 = vrot.slane %v313_v33, 2  ;;  %v937_v36 = vrot.slane %v2472_v8, 1  ;;  %v2766_v8 = vld [vmem:[#allocation12_spill] sm:$0xff] }
 0x252   : > { %v761_v1 = vmul.f32 %v2760_v47, %v2759_v50  ;;  %v2707_v23 = vrot.slane %v2480_v34, 3  ;;  %v645_v31 = vadd.f32 %v2369_v32, %v513_v49  ;;  %v2764_v22 = vperm.slane %v2355_v4, 1 }
 0x253   : > { %v2500_v7 = vsel %vm309_vm2, %v1043_v0, %v1059_v35  ;;  %v1164_v54 = vpop.permute.xlu1 %1163  ;;  %v324_v27 = vperm.slane %v317_v51, 0  ;;  %v325_v56 = vperm.slane %v317_v51, 1  ;;  %v646_v53 = vadd.f32 %v2372_v59, %v514_v25  ;;  %v2769_v25 = vld [vmem:[#allocation8_spill] sm:$0xff] }
 0x254   : > { %v762_v50 = vmul.f32 %v2765_v63, %v2764_v22  ;;  %v769_v41 = vadd.f32 %v761_v1, %v644_v2  ;;  %v763_v33 = vmul.f32 %v2766_v8, %v2407_v17  ;;  %v515_v4 = vadd.f32 %v2331_v52, %v388_v29  ;;  %v2770_v22 = vld [vmem:[#allocation9_spill] sm:$0xff] }
 0x255   : > { %v2511_v49 = vperm.slane %v939_v19, 0  ;;  %v942_v5 = vperm.slane %v935_v11, 0  ;;  %v322_v26 = vperm.slane %v314_v55, 0  ;;  %v323_v57 = vperm.slane %v314_v55, 1 }
 0x256   : > { %v2506_v47 = vld [vmem:[#allocation1] sm:$0xff]  ;;  %v2509_v32 = vld [vmem:[#allocation1 + $0x9] sm:$0xff]  ;;  %v2514_v51 = vperm.slane %v939_v19, 1  ;;  %v2518_v59 = vperm.slane %v2707_v23, 0  ;;  %v770_v17 = vadd.f32 %v762_v50, %v645_v31  ;;  %v943_v2 = vperm.slane %v935_v11, 1  ;;  %v1162_v11 = vpop.permute.xlu0 %1161 }
 0x257   : > { %2767 = vst [vmem:[#allocation15_spill] sm:$0xff] %v2506_v47  ;;  %v1062_v52 = vrot.slane %v2500_v7, 1  ;;  %v1060_v1 = vsel %vm307_vm7, %v1043_v0, %v1059_v35  ;;  %v391_v29 = vmul.f32 %v2769_v25, %v324_v27  ;;  %v392_v55 = vmul.f32 %v2770_v22, %v325_v56  ;;  %v2771_v31 = vld [vmem:[#allocation16_spill] sm:$0xff]  ;;  %v2772_v7 = vld [vmem:[#allocation13_spill] sm:$0xff]  ;;  %v2773_v47 = vld [vmem:[#allocation6_spill] sm:$0xff] }
 0x258   : > { %2768 = vst [vmem:[#allocation42_spill] sm:$0xff] %v2509_v32  ;;  %v892_v19 = vadd.f32 %v2437_v12, %v769_v41  ;;  %v771_v63 = vadd.f32 %v763_v33, %v646_v53  ;;  %v944_v8 = vperm.slane %v937_v36, 0  ;;  %v647_v23 = vadd.f32 %v2376_v62, %v515_v4  ;;  %v2774_v25 = vld [vmem:[#allocation7_spill] sm:$0xff]  ;;  %v2775_v41 = vld [vmem:[#allocation17_spill] sm:$0xff] }
 0x259   : > { %1358 = vst [vmem:[#allocation1] ss:$9 sm:$0xff] %v2319_v40  ;;  %v1009_v50 = vmul.f32 %v2771_v31, %v942_v5  ;;  %v764_v32 = vmul.f32 %v2772_v7, %v2409_v18  ;;  %v389_v27 = vmul.f32 %v2773_v47, %v322_v26  ;;  %v390_v56 = vmul.f32 %v2774_v25, %v323_v57  ;;  %v2776_v57 = vld [vmem:[#allocation18_spill] sm:$0xff]  ;;  %v2777_v7 = vld [vmem:[#allocation44_spill] sm:$0xff] }
 0x25a   : > { %1359 = vst [vmem:[#allocation1 + $0x1] ss:$9 sm:$0xff] %v2324_v14  ;;  %v1067_v22 = vperm.slane %v1060_v1, 0  ;;  %v893_v12 = vadd.f32 %v2443_v6, %v770_v17  ;;  %v1010_v53 = vmul.f32 %v2775_v41, %v943_v2  ;;  %v1068_v62 = vperm.slane %v1060_v1, 1 }
 0x25b   : > { %1360 = vst [vmem:[#allocation1 + $0x2] ss:$9 sm:$0xff] %v2328_v16  ;;  %v2539_v33 = vsel %vm312_vm4, %v1043_v0, %v1059_v35  ;;  %v1065_v4 = vsel %vm315_vm6, %v1043_v0, %v1059_v35  ;;  %v1069_v18 = vperm.slane %v1062_v52, 0  ;;  %v518_v5 = vadd.f32 %v2345_v37, %v391_v29  ;;  %v1160_v2 = vpop.permute.xlu1 %1159  ;;  %v2778_v0 = vld [vmem:[#allocation24_spill] sm:$0xff]  ;;  %v2779_v29 = vld [vmem:[#allocation25_spill] sm:$0xff] }
 0x25c   : > { %1361 = vst [vmem:[#allocation1 + $0x3] ss:$9 sm:$0xff] %v2338_v21  ;;  %v1166_v47 = vsel %vm1165_vm11, %v1162_v11, %v1164_v54  ;;  %v894_v26 = vadd.f32 %v2446_v10, %v771_v63  ;;  %v1011_v6 = vmul.f32 %v2776_v57, %v944_v8  ;;  %v519_v17 = vadd.f32 %v2348_v28, %v392_v55  ;;  %v2780_v10 = vld [vmem:[#allocation26_spill] sm:$0xff] }
 0x25d   : > { %1362 = vst [vmem:[#allocation1 + $0x4] ss:$9 sm:$0xff] %v2351_v60  ;;  %v772_v1 = vadd.f32 %v764_v32, %v647_v23  ;;  %v945_v31 = vperm.slane %v937_v36, 1  ;;  %v516_v25 = vadd.f32 %v2777_v7, %v389_v27  ;;  %v517_v41 = vadd.f32 %v2342_v61, %v390_v56  ;;  %v2781_v32 = vld [vmem:[#allocation47_spill] sm:$0xff] }
 0x25e   : > { %1363 = vst [vmem:[#allocation1 + $0x5] ss:$9 sm:$0xff] %v2362_v9  ;;  %v1017_v35 = vadd.f32 %v1009_v50, %v892_v19  ;;  %v1134_v15 = vmul.f32 %v2778_v0, %v1067_v22  ;;  %v1018_v37 = vadd.f32 %v1010_v53, %v893_v12  ;;  %v1135_v46 = vmul.f32 %v2779_v29, %v1068_v62  ;;  %v2782_v19 = vld [vmem:[#allocation19_spill] sm:$0xff]  ;;  %v2783_v22 = vld [vmem:[#allocation45_spill] sm:$0xff]  ;;  %v2784_v53 = vld [vmem:[#allocation46_spill] sm:$0xff] }
 0x25f   : > { %v1066_v54 = vrot.slane %v1065_v4, 3  ;;  %v1182_v58 = vrot.slane %v1166_v47, 7  ;;  %v1136_v63 = vmul.f32 %v2780_v10, %v1069_v18  ;;  %v650_v8 = vadd.f32 %v2385_v42, %v518_v5 }
 0x260   : > { %v1167_v28 = vsel %vm1165_vm11, %v1160_v2, %v1162_v11  ;;  %v1019_v36 = vadd.f32 %v1011_v6, %v894_v26  ;;  %v1070_v23 = vperm.slane %v1062_v52, 1  ;;  %v651_v55 = vadd.f32 %v2781_v32, %v519_v17  ;;  %v2786_v26 = vld [vmem:[#allocation23_spill] sm:$0xff]  ;;  %v2792_v32 = vld [vmem:[#allocation30_spill] sm:$0xff] }
 0x261   : > { %v895_v61 = vadd.f32 %v2459_v24, %v772_v1  ;;  %v1012_v50 = vmul.f32 %v2782_v19, %v945_v31  ;;  %v648_v12 = vadd.f32 %v2783_v22, %v516_v25  ;;  %v649_v62 = vadd.f32 %v2784_v53, %v517_v41  ;;  %v2787_v17 = vld [vmem:[#allocation27_spill] sm:$0xff]  ;;  %v2788_v31 = vld [vmem:[#allocation22_spill] sm:$0xff]  ;;  %v2793_v19 = vld [vmem:[#allocation28_spill] sm:$0xff] }
 0x262   : > { %v2785_v42 = vrot.slane %v2480_v34, 3  ;;  %v1064_v11 = vrot.slane %v2539_v33, 2  ;;  %v2570_v18 = vadd.f32 %v1134_v15, %v1017_v35  ;;  %v2572_v24 = vadd.f32 %v1135_v46, %v1018_v37 }
 0x263   : > { %v1188_v5 = vsel %vm315_vm6, %v1167_v28, %v1182_v58  ;;  %v775_v47 = vadd.f32 %v2418_v45, %v650_v8  ;;  %v1015_v34 = vmul.f32 %v2786_v26, %v2518_v59  ;;  %v1073_v57 = vperm.slane %v1066_v54, 0  ;;  %v2797_v26 = vld [vmem:[#allocation39_spill] sm:$0xff] }
 0x264   : > { %v949_v4 = vperm.slane %v2785_v42, 1  ;;  %v1184_v33 = vsel %vm309_vm2, %v1167_v28, %v1182_v58  ;;  %v1186_v6 = vsel %vm312_vm4, %v1167_v28, %v1182_v58  ;;  %v2582_v15 = vadd.f32 %v1136_v63, %v1019_v36 }
 0x265   : > { %v2559_v27 = vld [vmem:[#allocation1] sm:$0xff]  ;;  %v2561_v56 = vld [vmem:[#allocation1 + $0x9] sm:$0xff]  ;;  %v1020_v46 = vadd.f32 %v1012_v50, %v895_v61  ;;  %v1137_v2 = vmul.f32 %v2787_v17, %v1070_v23  ;;  %v774_v45 = vadd.f32 %v2415_v13, %v649_v62  ;;  %v1183_v59 = vsel %vm307_vm7, %v1167_v28, %v1182_v58 }
 0x266   : > { %1366 = vst [vmem:[#allocation1] ss:$9 sm:$0xff] %v2319_v40  ;;  %v776_v40 = vadd.f32 %v2422_v43, %v651_v55  ;;  %v1189_v1 = vrot.slane %v1188_v5, 3  ;;  %v1016_v7 = vmul.f32 %v2788_v31, %v949_v4  ;;  %v1074_v25 = vperm.slane %v1066_v54, 1  ;;  %v2789_v58 = vld [vmem:[#allocation20_spill] sm:$0xff]  ;;  %v2794_v50 = vld [vmem:[#allocation29_spill] sm:$0xff] }
 0x267   : > { %1367 = vst [vmem:[#allocation1 + $0x1] ss:$9 sm:$0xff] %v2324_v14  ;;  %v773_v14 = vadd.f32 %v2412_v48, %v648_v12  ;;  %v1187_v41 = vrot.slane %v1186_v6, 2  ;;  %v898_v43 = vadd.f32 %v2468_v39, %v775_v47  ;;  %v1013_v48 = vmul.f32 %v2789_v58, %v2511_v49  ;;  %v2790_v39 = vld [vmem:[#allocation21_spill] sm:$0xff]  ;;  %v2795_v12 = vld [vmem:[#allocation32_spill] sm:$0xff] }
 0x268   : > { %1368 = vst [vmem:[#allocation1 + $0x2] ss:$9 sm:$0xff] %v2328_v16  ;;  %v1185_v16 = vrot.slane %v1184_v33, 1  ;;  %v899_v13 = vadd.f32 %v2490_v44, %v776_v40  ;;  %v1071_v35 = vperm.slane %v1064_v11, 0  ;;  %v1966_v0 = vmov 0   ;;  %v2791_v44 = vld [vmem:[#allocation31_spill] sm:$0xff] }
 0x269   : > { %1369 = vst [vmem:[#allocation1 + $0x3] ss:$9 sm:$0xff] %v2338_v21  ;;  %v1607_v21 = vld [vmem:[%s2704_s4] sm:$0xff]  ;;  %1877 = vset.pattern.permute.xlu0 %v1966_v0  ;;  %v1190_v37 = vperm.slane %v1183_v59, 0  ;;  %v896_v29 = vadd.f32 %v2462_v3, %v773_v14  ;;  %v1014_v54 = vmul.f32 %v2790_v39, %v2514_v51  ;;  %v1191_v10 = vperm.slane %v1183_v59, 1  ;;  %v2799_v40 = vld [vmem:[#allocation34_spill] sm:$0xff] }
 0x26a   : > { %1370 = vst [vmem:[#allocation1 + $0x4] ss:$9 sm:$0xff] %v2351_v60  ;;  %v1072_v60 = vperm.slane %v1064_v11, 1  ;;  %1610 = vperm.xlu0 %1877, %v1607_v21   ;;  %v1196_v63 = vperm.slane %v1189_v1, 0  ;;  %v1197_v8 = vperm.slane %v1189_v1, 1  ;;  %v1140_v28 = vmul.f32 %v2791_v44, %v1073_v57  ;;  %v2796_v11 = vld [vmem:[#allocation33_spill] sm:$0xff] }
 0x26b   : > { %1371 = vst [vmem:[#allocation1 + $0x5] ss:$9 sm:$0xff] %v2362_v9  ;;  %v897_v9 = vadd.f32 %v2465_v30, %v774_v45  ;;  %v1194_v36 = vperm.slane %v1187_v41, 0  ;;  %v1192_v49 = vperm.slane %v1185_v16, 0  ;;  %v1023_v23 = vadd.f32 %v1015_v34, %v898_v43  ;;  %v2798_v57 = vld [vmem:[#allocation38_spill] sm:$0xff]  ;;  %v2800_v14 = vld [vmem:[#allocation36_spill] sm:$0xff] }
 0x26c   : > { %v1141_v55 = vmul.f32 %v2792_v32, %v1074_v25  ;;  %v1024_v3 = vadd.f32 %v1016_v7, %v899_v13  ;;  %v1138_v30 = vmul.f32 %v2793_v19, %v1071_v35  ;;  %v1139_v22 = vmul.f32 %v2794_v50, %v1072_v60  ;;  %v2801_v43 = vld [vmem:[#allocation37_spill] sm:$0xff]  ;;  %v2802_v13 = vld [vmem:[#allocation40_spill] sm:$0xff]  ;;  %v2803_v35 = vld [vmem:[#allocation35_spill] sm:$0xff] }
 0x26d   : > { %v1195_v51 = vperm.slane %v1187_v41, 1  ;;  %v1257_v53 = vmul.f32 %v2795_v12, %v1190_v37  ;;  %v1021_v62 = vadd.f32 %v1013_v48, %v896_v29  ;;  %v1022_v42 = vadd.f32 %v1014_v54, %v897_v9  ;;  %v2806_v12 = vld [vmem:[#allocation15_spill] sm:$0xff] }
 0x26e   : > { %v1258_v5 = vmul.f32 %v2796_v11, %v1191_v10  ;;  %v1193_v47 = vperm.slane %v1185_v16, 1  ;;  %v1263_v34 = vmul.f32 %v2797_v26, %v1196_v63  ;;  %v1264_v33 = vmul.f32 %v2798_v57, %v1197_v8 }
 0x26f   : > { %v1259_v17 = vmul.f32 %v2799_v40, %v1192_v49  ;;  %v1261_v45 = vmul.f32 %v2800_v14, %v1194_v36  ;;  %v1145_v1 = vadd.f32 %v1137_v2, %v1020_v46  ;;  %v1148_v31 = vadd.f32 %v1140_v28, %v1023_v23  ;;  %v2805_v28 = vld [vmem:[#allocation49_spill] sm:$0xff]  ;;  %v1800_v40 = vld [vmem:[%s2703_s3 + $0x18] sm:$0xff] }
 0x270   : > { %v1149_v7 = vadd.f32 %v1141_v55, %v1024_v3  ;;  %v1265_v25 = vadd.f32 %v1257_v53, %v2570_v18  ;;  %v1146_v16 = vadd.f32 %v1138_v30, %v1021_v62  ;;  %v1147_v41 = vadd.f32 %v1139_v22, %v1022_v42  ;;  %v2807_v62 = vld [vmem:[#allocation42_spill] sm:$0xff] }
 0x271   : > { %v1262_v21 = vmul.f32 %v2801_v43, %v1195_v51  ;;  %v1260_v60 = vmul.f32 %v2803_v35, %v1193_v47  ;;  %v1267_v0 = vadd.f32 %v1259_v17, %v2582_v15  ;;  %v1271_v37 = vadd.f32 %v1263_v34, %v1148_v31  ;;  %v2804_v15 = vld [vmem:[#allocation48_spill] sm:$0xff]  ;;  %v1795_v17 = vld [vmem:[%s2703_s3 + $0x10] sm:$0xff] }
 0x272   : > { %v1269_v46 = vadd.f32 %v1261_v45, %v1146_v16  ;;  %v1372_v32 = vld [vmem:[#allocation1] sm:$0xff]  ;;  %v1373_v55 = vld [vmem:[#allocation1 + $0x9] sm:$0xff] }
 0x273   : > { %v1398_v51 = vld [vmem:[%s2703_s3] sm:$0xff]  ;;  %v1270_v57 = vadd.f32 %v1262_v21, %v1147_v41 }
 0x281   : > { %v2568_v52 = vpop.permute.xlu2 %1284 }
 0x289   : > { %v1283_v61 = vpop.permute.xlu2 %1282 }
 0x28a   : > { %v1290_v38 = vsel %vm1288_vm12, %v1283_v61, %v2568_v52 }
 0x28b   : > { %v1291_v58 = vmul.f32 %v1290_v38, %v2802_v13 }
 0x298   : > { %v1287_v4 = vpop.permute.xlu0 %1286 }
 0x299   : > { %v1289_v6 = vsel %vm1288_vm12, %v2568_v52, %v1287_v4  ;;  %v1266_v52 = vadd.f32 %v1258_v5, %v2572_v24  ;;  %v1268_v24 = vadd.f32 %v1260_v60, %v1145_v1 }
 0x29a   : > { %v1292_v59 = vmul.f32 %v1289_v6, %v2272_v20  ;;  %v1272_v20 = vadd.f32 %v1264_v33, %v1149_v7  ;;  %v1786_v6 = vld [vmem:[%s2703_s3 + $0x8] sm:$0xff] }
 0x29c   : > { %v1307_v48 = vrot.slane %v1292_v59, 7 }
 0x29e   : > { %v1308_v2 = vsel %vm307_vm7, %v1291_v58, %v1307_v48  ;;  %v1309_v18 = vsel %vm309_vm2, %v1291_v58, %v1307_v48  ;;  %v1313_v29 = vsel %vm315_vm6, %v1291_v58, %v1307_v48  ;;  %v1311_v9 = vsel %vm312_vm4, %v1291_v58, %v1307_v48 }
 0x29f   : > { %v1315_v39 = vperm.slane %v1308_v2, 0  ;;  %v1316_v54 = vperm.slane %v1308_v2, 1  ;;  %v1310_v10 = vrot.slane %v1309_v18, 1  ;;  %v1314_v63 = vrot.slane %v1313_v29, 3 }
 0x2a0   : > { %v1312_v8 = vrot.slane %v1311_v9, 2 }
 0x2a1   : > { %v1382_v44 = vmul.f32 %v2804_v15, %v1315_v39  ;;  %v1383_v36 = vmul.f32 %v2805_v28, %v1316_v54  ;;  %v1317_v49 = vperm.slane %v1310_v10, 0  ;;  %v1318_v23 = vperm.slane %v1310_v10, 1 }
 0x2a2   : > { %v1321_v61 = vperm.slane %v1314_v63, 0  ;;  %v1322_v3 = vperm.slane %v1314_v63, 1  ;;  %v1319_v19 = vperm.slane %v1312_v8, 0  ;;  %v1320_v30 = vperm.slane %v1312_v8, 1 }
 0x2a3   : > { %v1390_v50 = vadd.f32 %v1382_v44, %v1265_v25  ;;  %v1391_v22 = vadd.f32 %v1383_v36, %v1266_v52  ;;  %v1384_v53 = vmul.f32 %v2806_v12, %v1317_v49  ;;  %v1385_v42 = vmul.f32 %v2807_v62, %v1318_v23 }
 0x2a4   : > { %v1388_v4 = vmul.f32 %v1372_v32, %v1321_v61  ;;  %v1389_v11 = vmul.f32 %v1373_v55, %v1322_v3  ;;  %v1386_v5 = vmul.f32 %v2559_v27, %v1319_v19  ;;  %v1387_v47 = vmul.f32 %v2561_v56, %v1320_v30 }
 0x2a5   : > { %1791 = vmatpush.msk.msra.mxu2 %vm1405_vm13, %v1390_v50  ;;  %1793 = vmatpush.msk.msra.mxu3 %vm1405_vm13, %v1391_v22  ;;  %v1392_v26 = vadd.f32 %v1384_v53, %v1267_v0  ;;  %v1393_v34 = vadd.f32 %v1385_v42, %v1268_v24 }
 0x2a6   : > { %1792 = vmatmul.msk.f32.vlgmr.msra.gmra.mxu2 %vm1401_vm14, %v1398_v51  ;;  %1794 = vmatmul.msk.f32.vlgmr.msra.gmra.mxu3 %vm1401_vm14, %v1398_v51  ;;  %v1396_v33 = vadd.f32 %v1388_v4, %v1271_v37  ;;  %v1397_v38 = vadd.f32 %v1389_v11, %v1272_v20  ;;  %v1394_v27 = vadd.f32 %v1386_v5, %v1269_v46 }
 0x2a7   : > { %1787 = vmatpush.msk.msra.mxu0 %vm1405_vm13, %v1392_v26  ;;  %1789 = vmatpush.msk.msra.mxu1 %vm1405_vm13, %v1393_v34  ;;  %v1395_v56 = vadd.f32 %v1387_v47, %v1270_v57 }
 0x2a8   : > { %1801 = vmatpush.msk.msrb.mxu2 %vm1405_vm13, %v1396_v33  ;;  %1803 = vmatpush.msk.msrb.mxu3 %vm1405_vm13, %v1397_v38 }
 0x2a9   : > { %1788 = vmatmul.msk.f32.vlgmr.msra.gmra.mxu0 %vm1401_vm14, %v1786_v6  ;;  %1790 = vmatmul.msk.f32.vlgmr.msra.gmra.mxu1 %vm1401_vm14, %v1786_v6 }
 0x2aa   : > { %1796 = vmatpush.msk.msrb.mxu0 %vm1405_vm13, %v1394_v27  ;;  %1798 = vmatpush.msk.msrb.mxu1 %vm1405_vm13, %v1395_v56 }
 0x2ae   : > { %1802 = vmatmul.msk.f32.vlgmr.msrb.gmra.mxu2 %vm1401_vm14, %v1800_v40  ;;  %1804 = vmatmul.msk.f32.vlgmr.msrb.gmra.mxu3 %vm1401_vm14, %v1800_v40 }
 0x2b1   : > { %1797 = vmatmul.msk.f32.vlgmr.msrb.gmra.mxu0 %vm1401_vm14, %v1795_v17  ;;  %1799 = vmatmul.msk.f32.vlgmr.msrb.gmra.mxu1 %vm1401_vm14, %v1795_v17 }
 0x2dc   : > { %v1611_v21 = vpop.permute.xlu0 %1610 }
 0x326   : > { %v1429_v14 = vpop.f32.mrf.mxu0  ;;  %v1449_v45 = vpop.f32.mrf.mxu1 }
 0x329   : > { %v1478_v59 = vpop.f32.mrf.mxu2  ;;  %v1498_v1 = vpop.f32.mrf.mxu3 }
 0x32a   : > { %v1479_v31 = vadd.f32 %v1478_v59, %v1429_v14  ;;  %v1499_v7 = vadd.f32 %v1498_v1, %v1449_v45 }
 0x32e   : > { %v1529_v25 = vpop.f32.mrf.mxu0  ;;  %v1549_v16 = vpop.f32.mrf.mxu1 }
 0x32f   : > { %v1552_v41 = vadd.f32 %v1529_v25, %v1479_v31  ;;  %v1553_v43 = vadd.f32 %v1549_v16, %v1499_v7 }
 0x331   : > { %v1582_v13 = vpop.f32.mrf.mxu2  ;;  %v1602_v58 = vpop.f32.mrf.mxu3 }
 0x332   : > { %v1605_v48 = vadd.f32 %v1582_v13, %v1552_v41  ;;  %v1606_v52 = vadd.f32 %v1602_v58, %v1553_v43 }
 0x334   : > { %v1613_v35 = vadd.f32 %v1611_v21, %v1605_v48  ;;  %v1614_v60 = vadd.f32 %v1611_v21, %v1606_v52 }
 0x336   : > { %1615 = vst [vmem:[%s262_s14] sm:$0xff] %v1613_v35 }
 0x337   : > { %1616 = vst [vmem:[%s262_s14 + $0x8] sm:$0xff] %v1614_v60 }
 0x338   : > { %1905 = shalt.err (!%p1902_p5)
}
 0x339   : > { %1813 = dma.vmem_to_hbm [thread:$0]  (%p2037_p4), %s1634_s15, 256, %s1636_s16, %s1618_s21  }
 0x33a PF: > { %p1819_p6 = scmp.ge.s32.totalorder %s1956_s23, 2  ;;  %s1647_s8 = sand.u32 1, %s1936_s18  }
 0x33b   : > { %s1648_s10 = scalar_lea.sflag [#allocation3], %s1647_s8 }
 0x33c   : > { %p1816_p7 = pnand %p1819_p6, %p2044_p8 }
 0x33e   : > { %p1817_p9 = pneg %p1816_p7 }
 0x340   : > { %1931 = dma.done.wait (%p1817_p9), %s1648_s10, 256  }
 0x341   : > { %1933 = vsyncadd (%p1817_p9), %s1648_s10, 4294967040  ;;  %s18_s23 = sadd.s32 1, %s1956_s23   ;;  %s2808_s18 = smov %s1940_s19 }
 0x342   : > { %p15_p10 = scmp.ge.s32.totalorder %s18_s23, 4   ;;  %s2809_s19 = smov %s1944_s20 }
 0x343   : > { %s2810_s20 = smov %s2050_s6  ;;  %s2811_s21 = smov %s1952_s22 }
 0x344   : > { %s2812_s22 = smov %s2814_s26  ;;  %17 = sbr.rel (!%p15_p10) target bundleno = 4 (0x4), region = 188 }
 0x349   :  { %1654 = vsyncpa [#allocation3], 1 }
 0x34a   :  { %1656 = vsyncpa [#allocation3 + $0x1], 1 }

</bundles_post_ra>
